<compile_context>
chip_gen: v7x
topology: tpu7x:2x2x1
jax: 0.10.0
libtpu: 0.0.40
codegen_flags: <defaults>
</compile_context>

<pallas_src>
import jax
import jax.numpy as jnp
import numpy as np
from jax.experimental import pallas as pl
from jax.experimental.pallas import tpu as pltpu

K = 7      # conv kernel size
PAD = 3    # conv padding


def _shiftz(m, d):
    """Zero-fill shift along the last axis: out[..., i] = m[..., i + d] (static d)."""
    size = m.shape[-1]
    if d == 0:
        return m
    if abs(d) >= size:
        return jnp.zeros_like(m)
    zeros = jnp.zeros(m.shape[:-1] + (abs(d),), m.dtype)
    if d > 0:
        return jnp.concatenate([m[..., d:], zeros], axis=-1)
    return jnp.concatenate([zeros, m[..., :d]], axis=-1)


def _make_kernel(H, W):
    HW = H * W

    def kernel(w_ref, b_ref, x_ref, o_ref):
        # w_ref: SMEM (2*K*K,) flattened conv weight [in-ch 0 = avg, 1 = max]
        # b_ref: SMEM (1,)     conv bias
        # x_ref / o_ref: VMEM (bt, C, HW), lane-dense flattened spatial dims
        x = x_ref[...]                           # keep native dtype
        xf = x.astype(jnp.float32)
        avg = jnp.mean(xf, axis=1)               # (bt, HW) channel mean
        mx = jnp.max(xf, axis=1)                 # (bt, HW) channel max

        # Column index of every flat position; used to mask the lanes where a
        # horizontal shift would bleed into the neighbouring image row.
        lane = jax.lax.broadcasted_iota(jnp.int32, (1, HW), 1)
        if W & (W - 1) == 0:
            col = lane & (W - 1)
        else:
            col = lane % W

        # Horizontal taps: 7 zero-fill lane shifts per map, masked once each.
        h_avg, h_mx = {}, {}
        for ox in range(-PAD, PAD + 1):
            sa = _shiftz(avg, ox)
            sm = _shiftz(mx, ox)
            if ox != 0:
                if ox > 0:
                    valid = col < (W - ox)
                else:
                    valid = col >= (-ox)
                sa = jnp.where(valid, sa, 0.0)
                sm = jnp.where(valid, sm, 0.0)
            h_avg[ox] = sa
            h_mx[ox] = sm

        # Per vertical offset: combine the 14 horizontal taps with their scalar
        # weights (two independent accumulator chains per offset), then shift
        # the whole strip vertically by oy rows (= oy*W lanes, zero filled).
        terms = []
        for oy in range(-PAD, PAD + 1):
            acc_a = jnp.zeros_like(avg)
            acc_m = jnp.zeros_like(mx)
            for ox in range(-PAD, PAD + 1):
                wi = (oy + PAD) * K + (ox + PAD)
                acc_a = acc_a + w_ref[wi] * h_avg[ox]
                acc_m = acc_m + w_ref[K * K + wi] * h_mx[ox]
            terms.append(_shiftz(acc_a + acc_m, oy * W))

        # Balanced reduction of the 7 independent vertical terms + bias.
        conv = (((terms[0] + terms[1]) + (terms[2] + terms[3]))
                + ((terms[4] + terms[5]) + (terms[6] + b_ref[0])))
        attn = jax.nn.sigmoid(conv)              # (bt, HW)

        # Apply attention; multiply in the input dtype (bf16 stays bf16).
        o_ref[...] = (x * attn[:, None, :].astype(x.dtype)).astype(o_ref.dtype)

    return kernel


def spatial_attention(x, weight, bias, *, batch_block=None):
    """x: (B, C, H, W); weight: (1, 2, K, K); bias: (1,). Returns (B, C, H, W)."""
    B, C, H, W = x.shape
    HW = H * W
    x3 = x.reshape(B, C, HW)                     # lane-dense view (free in XLA)
    w_flat = weight.reshape(-1).astype(jnp.float32)
    b = bias.reshape(-1).astype(jnp.float32)

    if batch_block is None:
        # Amortize per-grid-step overhead, keep the double-buffered in+out
        # footprint well inside scoped VMEM, and keep >= 2 grid steps when
        # B >= 2 so both v7x TensorCores get work.  (For huge C*H*W a
        # channel-tiled two-pass variant would be the next step.)
        per_image_bytes = C * HW * x.dtype.itemsize
        batch_block = max(1, min(B, (3 * 1024 * 1024) // max(per_image_bytes, 1)))
        if B >= 2:
            batch_block = max(1, min(batch_block, B // 2))
    batch_block = max(1, min(batch_block, B))
    while B % batch_block:                       # make it divide B exactly
        batch_block -= 1

    out3 = pl.pallas_call(
        _make_kernel(H, W),
        out_shape=jax.ShapeDtypeStruct((B, C, HW), x.dtype),
        grid=(B // batch_block,),
        in_specs=[
            pl.BlockSpec(memory_space=pltpu.MemorySpace.SMEM),   # conv weight
            pl.BlockSpec(memory_space=pltpu.MemorySpace.SMEM),   # conv bias
            pl.BlockSpec((batch_block, C, HW), lambda i: (i, 0, 0)),
        ],
        out_specs=pl.BlockSpec((batch_block, C, HW), lambda i: (i, 0, 0)),
        compiler_params=pltpu.CompilerParams(
            dimension_semantics=("parallel",),
            vmem_limit_bytes=32 * 1024 * 1024,
        ),
    )(w_flat, b, x3)
    return out3.reshape(B, C, H, W)


def reference(x, weight, bias):
    """Pure-JAX reference matching the PyTorch module exactly."""
    avg = jnp.mean(x, axis=1, keepdims=True)
    mx = jnp.max(x, axis=1, keepdims=True)
    cat = jnp.concatenate([avg, mx], axis=1)
    conv = jax.lax.conv_general_dilated(
        cat, weight, window_strides=(1, 1), padding=((PAD, PAD), (PAD, PAD)),
        dimension_numbers=("NCHW", "OIHW", "NCHW"))
    attn = jax.nn.sigmoid(conv + bias.reshape(1, -1, 1, 1))
    return x * attn


if __name__ == "__main__":
    key = jax.random.PRNGKey(0)
    kx, kw, kb = jax.random.split(key, 3)

    B, C, H, W = 2, 4, 16, 16
    x = jax.random.normal(kx, (B, C, H, W), jnp.float32)
    # Deterministic synthetic parameters (Conv2d(2, 1, kernel_size=7) shapes).
    weight = jax.random.normal(kw, (1, 2, K, K), jnp.float32) * 0.1
    bias = jax.random.normal(kb, (1,), jnp.float32) * 0.1

    out = jax.block_until_ready(spatial_attention(x, weight, bias))

    ref = reference(x, weight, bias)
    np.testing.assert_allclose(np.asarray(out), np.asarray(ref),
                               rtol=1e-5, atol=1e-5)
    print("KERNEL_OK")
</pallas_src>

<mosaic_0001>
module attributes {stable_mosaic.version = 11 : i64} {
  func.func @kernel(%arg0: i32, %arg1: memref<98xf32, #tpu.memory_space<smem>>, %arg2: memref<1xf32, #tpu.memory_space<smem>>, %arg3: memref<1x4x256xf32, #tpu.memory_space<vmem>>, %arg4: memref<1x4x256xf32, #tpu.memory_space<vmem>>) attributes {dimension_semantics = [#tpu.dimension_semantics<parallel>], iteration_bounds = array<i64: 2>, scalar_prefetch = 0 : i64, scratch_operands = 0 : i64, tpu.core_type = #tpu.core_type<tc>, window_params = [{transform_indices = @transform_0, window_bounds = array<i64: 98>}, {transform_indices = @transform_1, window_bounds = array<i64: 1>}, {transform_indices = @transform_2, window_bounds = array<i64: 1, 4, 256>}, {transform_indices = @transform_3, window_bounds = array<i64: 1, 4, 256>}]} {
    %c0 = arith.constant 0 : index
    %c0_0 = arith.constant 0 : index
    %c0_1 = arith.constant 0 : index
    %0 = vector.load %arg3[%c0, %c0_0, %c0_1] : memref<1x4x256xf32, #tpu.memory_space<vmem>>, vector<1x4x256xf32>
    %cst = arith.constant dense<0.000000e+00> : vector<1x256xf32>
    %1 = vector.multi_reduction <add>, %0, %cst [1] : vector<1x4x256xf32> to vector<1x256xf32>
    %cst_2 = arith.constant 4.000000e+00 : f32
    %2 = vector.broadcast %cst_2 : f32 to vector<1x256xf32>
    %3 = arith.divf %1, %2 : vector<1x256xf32>
    %cst_3 = arith.constant dense<0xFF800000> : vector<1x256xf32>
    %4 = vector.multi_reduction <maximumf>, %0, %cst_3 [1] : vector<1x4x256xf32> to vector<1x256xf32>
    %5 = tpu.iota {dimensions = array<i32: 1>} : vector<1x256xi32>
    %c15_i32 = arith.constant 15 : i32
    %6 = vector.broadcast %c15_i32 : i32 to vector<1x256xi32>
    %7 = arith.andi %5, %6 : vector<1x256xi32>
    %cst_4 = arith.constant 0.000000e+00 : f32
    %8 = vector.broadcast %cst_4 : f32 to vector<1x3xf32>
    %9 = vector.extract_strided_slice %3 {offsets = [0, 0], sizes = [1, 253], strides = [1, 1]} : vector<1x256xf32> to vector<1x253xf32>
    %10 = tpu.concatenate %8, %9 in 1 : vector<1x3xf32>, vector<1x253xf32> -> vector<1x256xf32>
    %cst_5 = arith.constant 0.000000e+00 : f32
    %11 = vector.broadcast %cst_5 : f32 to vector<1x3xf32>
    %12 = vector.extract_strided_slice %4 {offsets = [0, 0], sizes = [1, 253], strides = [1, 1]} : vector<1x256xf32> to vector<1x253xf32>
    %13 = tpu.concatenate %11, %12 in 1 : vector<1x3xf32>, vector<1x253xf32> -> vector<1x256xf32>
    %c3_i32 = arith.constant 3 : i32
    %14 = vector.broadcast %c3_i32 : i32 to vector<1x256xi32>
    %15 = arith.cmpi sge, %7, %14 : vector<1x256xi32>
    %cst_6 = arith.constant 0.000000e+00 : f32
    %16 = vector.broadcast %cst_6 : f32 to vector<1x256xf32>
    %17 = arith.select %15, %10, %16 : vector<1x256xi1>, vector<1x256xf32>
    %cst_7 = arith.constant 0.000000e+00 : f32
    %18 = vector.broadcast %cst_7 : f32 to vector<1x256xf32>
    %19 = arith.select %15, %13, %18 : vector<1x256xi1>, vector<1x256xf32>
    %cst_8 = arith.constant 0.000000e+00 : f32
    %20 = vector.broadcast %cst_8 : f32 to vector<1x2xf32>
    %21 = vector.extract_strided_slice %3 {offsets = [0, 0], sizes = [1, 254], strides = [1, 1]} : vector<1x256xf32> to vector<1x254xf32>
    %22 = tpu.concatenate %20, %21 in 1 : vector<1x2xf32>, vector<1x254xf32> -> vector<1x256xf32>
    %cst_9 = arith.constant 0.000000e+00 : f32
    %23 = vector.broadcast %cst_9 : f32 to vector<1x2xf32>
    %24 = vector.extract_strided_slice %4 {offsets = [0, 0], sizes = [1, 254], strides = [1, 1]} : vector<1x256xf32> to vector<1x254xf32>
    %25 = tpu.concatenate %23, %24 in 1 : vector<1x2xf32>, vector<1x254xf32> -> vector<1x256xf32>
    %c2_i32 = arith.constant 2 : i32
    %26 = vector.broadcast %c2_i32 : i32 to vector<1x256xi32>
    %27 = arith.cmpi sge, %7, %26 : vector<1x256xi32>
    %cst_10 = arith.constant 0.000000e+00 : f32
    %28 = vector.broadcast %cst_10 : f32 to vector<1x256xf32>
    %29 = arith.select %27, %22, %28 : vector<1x256xi1>, vector<1x256xf32>
    %cst_11 = arith.constant 0.000000e+00 : f32
    %30 = vector.broadcast %cst_11 : f32 to vector<1x256xf32>
    %31 = arith.select %27, %25, %30 : vector<1x256xi1>, vector<1x256xf32>
    %cst_12 = arith.constant 0.000000e+00 : f32
    %32 = vector.broadcast %cst_12 : f32 to vector<1x1xf32>
    %33 = vector.extract_strided_slice %3 {offsets = [0, 0], sizes = [1, 255], strides = [1, 1]} : vector<1x256xf32> to vector<1x255xf32>
    %34 = tpu.concatenate %32, %33 in 1 : vector<1x1xf32>, vector<1x255xf32> -> vector<1x256xf32>
    %cst_13 = arith.constant 0.000000e+00 : f32
    %35 = vector.broadcast %cst_13 : f32 to vector<1x1xf32>
    %36 = vector.extract_strided_slice %4 {offsets = [0, 0], sizes = [1, 255], strides = [1, 1]} : vector<1x256xf32> to vector<1x255xf32>
    %37 = tpu.concatenate %35, %36 in 1 : vector<1x1xf32>, vector<1x255xf32> -> vector<1x256xf32>
    %c1_i32 = arith.constant 1 : i32
    %38 = vector.broadcast %c1_i32 : i32 to vector<1x256xi32>
    %39 = arith.cmpi sge, %7, %38 : vector<1x256xi32>
    %cst_14 = arith.constant 0.000000e+00 : f32
    %40 = vector.broadcast %cst_14 : f32 to vector<1x256xf32>
    %41 = arith.select %39, %34, %40 : vector<1x256xi1>, vector<1x256xf32>
    %cst_15 = arith.constant 0.000000e+00 : f32
    %42 = vector.broadcast %cst_15 : f32 to vector<1x256xf32>
    %43 = arith.select %39, %37, %42 : vector<1x256xi1>, vector<1x256xf32>
    %cst_16 = arith.constant 0.000000e+00 : f32
    %44 = vector.broadcast %cst_16 : f32 to vector<1x1xf32>
    %45 = vector.extract_strided_slice %3 {offsets = [0, 1], sizes = [1, 255], strides = [1, 1]} : vector<1x256xf32> to vector<1x255xf32>
    %46 = tpu.concatenate %45, %44 in 1 : vector<1x255xf32>, vector<1x1xf32> -> vector<1x256xf32>
    %cst_17 = arith.constant 0.000000e+00 : f32
    %47 = vector.broadcast %cst_17 : f32 to vector<1x1xf32>
    %48 = vector.extract_strided_slice %4 {offsets = [0, 1], sizes = [1, 255], strides = [1, 1]} : vector<1x256xf32> to vector<1x255xf32>
    %49 = tpu.concatenate %48, %47 in 1 : vector<1x255xf32>, vector<1x1xf32> -> vector<1x256xf32>
    %c15_i32_18 = arith.constant 15 : i32
    %50 = vector.broadcast %c15_i32_18 : i32 to vector<1x256xi32>
    %51 = arith.cmpi slt, %7, %50 : vector<1x256xi32>
    %cst_19 = arith.constant 0.000000e+00 : f32
    %52 = vector.broadcast %cst_19 : f32 to vector<1x256xf32>
    %53 = arith.select %51, %46, %52 : vector<1x256xi1>, vector<1x256xf32>
    %cst_20 = arith.constant 0.000000e+00 : f32
    %54 = vector.broadcast %cst_20 : f32 to vector<1x256xf32>
    %55 = arith.select %51, %49, %54 : vector<1x256xi1>, vector<1x256xf32>
    %cst_21 = arith.constant 0.000000e+00 : f32
    %56 = vector.broadcast %cst_21 : f32 to vector<1x2xf32>
    %57 = vector.extract_strided_slice %3 {offsets = [0, 2], sizes = [1, 254], strides = [1, 1]} : vector<1x256xf32> to vector<1x254xf32>
    %58 = tpu.concatenate %57, %56 in 1 : vector<1x254xf32>, vector<1x2xf32> -> vector<1x256xf32>
    %cst_22 = arith.constant 0.000000e+00 : f32
    %59 = vector.broadcast %cst_22 : f32 to vector<1x2xf32>
    %60 = vector.extract_strided_slice %4 {offsets = [0, 2], sizes = [1, 254], strides = [1, 1]} : vector<1x256xf32> to vector<1x254xf32>
    %61 = tpu.concatenate %60, %59 in 1 : vector<1x254xf32>, vector<1x2xf32> -> vector<1x256xf32>
    %c14_i32 = arith.constant 14 : i32
    %62 = vector.broadcast %c14_i32 : i32 to vector<1x256xi32>
    %63 = arith.cmpi slt, %7, %62 : vector<1x256xi32>
    %cst_23 = arith.constant 0.000000e+00 : f32
    %64 = vector.broadcast %cst_23 : f32 to vector<1x256xf32>
    %65 = arith.select %63, %58, %64 : vector<1x256xi1>, vector<1x256xf32>
    %cst_24 = arith.constant 0.000000e+00 : f32
    %66 = vector.broadcast %cst_24 : f32 to vector<1x256xf32>
    %67 = arith.select %63, %61, %66 : vector<1x256xi1>, vector<1x256xf32>
    %cst_25 = arith.constant 0.000000e+00 : f32
    %68 = vector.broadcast %cst_25 : f32 to vector<1x3xf32>
    %69 = vector.extract_strided_slice %3 {offsets = [0, 3], sizes = [1, 253], strides = [1, 1]} : vector<1x256xf32> to vector<1x253xf32>
    %70 = tpu.concatenate %69, %68 in 1 : vector<1x253xf32>, vector<1x3xf32> -> vector<1x256xf32>
    %cst_26 = arith.constant 0.000000e+00 : f32
    %71 = vector.broadcast %cst_26 : f32 to vector<1x3xf32>
    %72 = vector.extract_strided_slice %4 {offsets = [0, 3], sizes = [1, 253], strides = [1, 1]} : vector<1x256xf32> to vector<1x253xf32>
    %73 = tpu.concatenate %72, %71 in 1 : vector<1x253xf32>, vector<1x3xf32> -> vector<1x256xf32>
    %c13_i32 = arith.constant 13 : i32
    %74 = vector.broadcast %c13_i32 : i32 to vector<1x256xi32>
    %75 = arith.cmpi slt, %7, %74 : vector<1x256xi32>
    %cst_27 = arith.constant 0.000000e+00 : f32
    %76 = vector.broadcast %cst_27 : f32 to vector<1x256xf32>
    %77 = arith.select %75, %70, %76 : vector<1x256xi1>, vector<1x256xf32>
    %cst_28 = arith.constant 0.000000e+00 : f32
    %78 = vector.broadcast %cst_28 : f32 to vector<1x256xf32>
    %79 = arith.select %75, %73, %78 : vector<1x256xi1>, vector<1x256xf32>
    %cst_29 = arith.constant 0.000000e+00 : f32
    %80 = vector.broadcast %cst_29 : f32 to vector<1x256xf32>
    %cst_30 = arith.constant 0.000000e+00 : f32
    %81 = vector.broadcast %cst_30 : f32 to vector<1x256xf32>
    %c0_31 = arith.constant 0 : index
    %82 = memref.load %arg1[%c0_31] : memref<98xf32, #tpu.memory_space<smem>>
    %83 = vector.broadcast %82 : f32 to vector<1x256xf32>
    %84 = arith.mulf %83, %17 : vector<1x256xf32>
    %85 = arith.addf %80, %84 : vector<1x256xf32>
    %c49 = arith.constant 49 : index
    %86 = memref.load %arg1[%c49] : memref<98xf32, #tpu.memory_space<smem>>
    %87 = vector.broadcast %86 : f32 to vector<1x256xf32>
    %88 = arith.mulf %87, %19 : vector<1x256xf32>
    %89 = arith.addf %81, %88 : vector<1x256xf32>
    %c1 = arith.constant 1 : index
    %90 = memref.load %arg1[%c1] : memref<98xf32, #tpu.memory_space<smem>>
    %91 = vector.broadcast %90 : f32 to vector<1x256xf32>
    %92 = arith.mulf %91, %29 : vector<1x256xf32>
    %93 = arith.addf %85, %92 : vector<1x256xf32>
    %c50 = arith.constant 50 : index
    %94 = memref.load %arg1[%c50] : memref<98xf32, #tpu.memory_space<smem>>
    %95 = vector.broadcast %94 : f32 to vector<1x256xf32>
    %96 = arith.mulf %95, %31 : vector<1x256xf32>
    %97 = arith.addf %89, %96 : vector<1x256xf32>
    %c2 = arith.constant 2 : index
    %98 = memref.load %arg1[%c2] : memref<98xf32, #tpu.memory_space<smem>>
    %99 = vector.broadcast %98 : f32 to vector<1x256xf32>
    %100 = arith.mulf %99, %41 : vector<1x256xf32>
    %101 = arith.addf %93, %100 : vector<1x256xf32>
    %c51 = arith.constant 51 : index
    %102 = memref.load %arg1[%c51] : memref<98xf32, #tpu.memory_space<smem>>
    %103 = vector.broadcast %102 : f32 to vector<1x256xf32>
    %104 = arith.mulf %103, %43 : vector<1x256xf32>
    %105 = arith.addf %97, %104 : vector<1x256xf32>
    %c3 = arith.constant 3 : index
    %106 = memref.load %arg1[%c3] : memref<98xf32, #tpu.memory_space<smem>>
    %107 = vector.broadcast %106 : f32 to vector<1x256xf32>
    %108 = arith.mulf %107, %3 : vector<1x256xf32>
    %109 = arith.addf %101, %108 : vector<1x256xf32>
    %c52 = arith.constant 52 : index
    %110 = memref.load %arg1[%c52] : memref<98xf32, #tpu.memory_space<smem>>
    %111 = vector.broadcast %110 : f32 to vector<1x256xf32>
    %112 = arith.mulf %111, %4 : vector<1x256xf32>
    %113 = arith.addf %105, %112 : vector<1x256xf32>
    %c4 = arith.constant 4 : index
    %114 = memref.load %arg1[%c4] : memref<98xf32, #tpu.memory_space<smem>>
    %115 = vector.broadcast %114 : f32 to vector<1x256xf32>
    %116 = arith.mulf %115, %53 : vector<1x256xf32>
    %117 = arith.addf %109, %116 : vector<1x256xf32>
    %c53 = arith.constant 53 : index
    %118 = memref.load %arg1[%c53] : memref<98xf32, #tpu.memory_space<smem>>
    %119 = vector.broadcast %118 : f32 to vector<1x256xf32>
    %120 = arith.mulf %119, %55 : vector<1x256xf32>
    %121 = arith.addf %113, %120 : vector<1x256xf32>
    %c5 = arith.constant 5 : index
    %122 = memref.load %arg1[%c5] : memref<98xf32, #tpu.memory_space<smem>>
    %123 = vector.broadcast %122 : f32 to vector<1x256xf32>
    %124 = arith.mulf %123, %65 : vector<1x256xf32>
    %125 = arith.addf %117, %124 : vector<1x256xf32>
    %c54 = arith.constant 54 : index
    %126 = memref.load %arg1[%c54] : memref<98xf32, #tpu.memory_space<smem>>
    %127 = vector.broadcast %126 : f32 to vector<1x256xf32>
    %128 = arith.mulf %127, %67 : vector<1x256xf32>
    %129 = arith.addf %121, %128 : vector<1x256xf32>
    %c6 = arith.constant 6 : index
    %130 = memref.load %arg1[%c6] : memref<98xf32, #tpu.memory_space<smem>>
    %131 = vector.broadcast %130 : f32 to vector<1x256xf32>
    %132 = arith.mulf %131, %77 : vector<1x256xf32>
    %133 = arith.addf %125, %132 : vector<1x256xf32>
    %c55 = arith.constant 55 : index
    %134 = memref.load %arg1[%c55] : memref<98xf32, #tpu.memory_space<smem>>
    %135 = vector.broadcast %134 : f32 to vector<1x256xf32>
    %136 = arith.mulf %135, %79 : vector<1x256xf32>
    %137 = arith.addf %129, %136 : vector<1x256xf32>
    %138 = arith.addf %133, %137 : vector<1x256xf32>
    %cst_32 = arith.constant 0.000000e+00 : f32
    %139 = vector.broadcast %cst_32 : f32 to vector<1x48xf32>
    %140 = vector.extract_strided_slice %138 {offsets = [0, 0], sizes = [1, 208], strides = [1, 1]} : vector<1x256xf32> to vector<1x208xf32>
    %141 = tpu.concatenate %139, %140 in 1 : vector<1x48xf32>, vector<1x208xf32> -> vector<1x256xf32>
    %cst_33 = arith.constant 0.000000e+00 : f32
    %142 = vector.broadcast %cst_33 : f32 to vector<1x256xf32>
    %cst_34 = arith.constant 0.000000e+00 : f32
    %143 = vector.broadcast %cst_34 : f32 to vector<1x256xf32>
    %c7 = arith.constant 7 : index
    %144 = memref.load %arg1[%c7] : memref<98xf32, #tpu.memory_space<smem>>
    %145 = vector.broadcast %144 : f32 to vector<1x256xf32>
    %146 = arith.mulf %145, %17 : vector<1x256xf32>
    %147 = arith.addf %142, %146 : vector<1x256xf32>
    %c56 = arith.constant 56 : index
    %148 = memref.load %arg1[%c56] : memref<98xf32, #tpu.memory_space<smem>>
    %149 = vector.broadcast %148 : f32 to vector<1x256xf32>
    %150 = arith.mulf %149, %19 : vector<1x256xf32>
    %151 = arith.addf %143, %150 : vector<1x256xf32>
    %c8 = arith.constant 8 : index
    %152 = memref.load %arg1[%c8] : memref<98xf32, #tpu.memory_space<smem>>
    %153 = vector.broadcast %152 : f32 to vector<1x256xf32>
    %154 = arith.mulf %153, %29 : vector<1x256xf32>
    %155 = arith.addf %147, %154 : vector<1x256xf32>
    %c57 = arith.constant 57 : index
    %156 = memref.load %arg1[%c57] : memref<98xf32, #tpu.memory_space<smem>>
    %157 = vector.broadcast %156 : f32 to vector<1x256xf32>
    %158 = arith.mulf %157, %31 : vector<1x256xf32>
    %159 = arith.addf %151, %158 : vector<1x256xf32>
    %c9 = arith.constant 9 : index
    %160 = memref.load %arg1[%c9] : memref<98xf32, #tpu.memory_space<smem>>
    %161 = vector.broadcast %160 : f32 to vector<1x256xf32>
    %162 = arith.mulf %161, %41 : vector<1x256xf32>
    %163 = arith.addf %155, %162 : vector<1x256xf32>
    %c58 = arith.constant 58 : index
    %164 = memref.load %arg1[%c58] : memref<98xf32, #tpu.memory_space<smem>>
    %165 = vector.broadcast %164 : f32 to vector<1x256xf32>
    %166 = arith.mulf %165, %43 : vector<1x256xf32>
    %167 = arith.addf %159, %166 : vector<1x256xf32>
    %c10 = arith.constant 10 : index
    %168 = memref.load %arg1[%c10] : memref<98xf32, #tpu.memory_space<smem>>
    %169 = vector.broadcast %168 : f32 to vector<1x256xf32>
    %170 = arith.mulf %169, %3 : vector<1x256xf32>
    %171 = arith.addf %163, %170 : vector<1x256xf32>
    %c59 = arith.constant 59 : index
    %172 = memref.load %arg1[%c59] : memref<98xf32, #tpu.memory_space<smem>>
    %173 = vector.broadcast %172 : f32 to vector<1x256xf32>
    %174 = arith.mulf %173, %4 : vector<1x256xf32>
    %175 = arith.addf %167, %174 : vector<1x256xf32>
    %c11 = arith.constant 11 : index
    %176 = memref.load %arg1[%c11] : memref<98xf32, #tpu.memory_space<smem>>
    %177 = vector.broadcast %176 : f32 to vector<1x256xf32>
    %178 = arith.mulf %177, %53 : vector<1x256xf32>
    %179 = arith.addf %171, %178 : vector<1x256xf32>
    %c60 = arith.constant 60 : index
    %180 = memref.load %arg1[%c60] : memref<98xf32, #tpu.memory_space<smem>>
    %181 = vector.broadcast %180 : f32 to vector<1x256xf32>
    %182 = arith.mulf %181, %55 : vector<1x256xf32>
    %183 = arith.addf %175, %182 : vector<1x256xf32>
    %c12 = arith.constant 12 : index
    %184 = memref.load %arg1[%c12] : memref<98xf32, #tpu.memory_space<smem>>
    %185 = vector.broadcast %184 : f32 to vector<1x256xf32>
    %186 = arith.mulf %185, %65 : vector<1x256xf32>
    %187 = arith.addf %179, %186 : vector<1x256xf32>
    %c61 = arith.constant 61 : index
    %188 = memref.load %arg1[%c61] : memref<98xf32, #tpu.memory_space<smem>>
    %189 = vector.broadcast %188 : f32 to vector<1x256xf32>
    %190 = arith.mulf %189, %67 : vector<1x256xf32>
    %191 = arith.addf %183, %190 : vector<1x256xf32>
    %c13 = arith.constant 13 : index
    %192 = memref.load %arg1[%c13] : memref<98xf32, #tpu.memory_space<smem>>
    %193 = vector.broadcast %192 : f32 to vector<1x256xf32>
    %194 = arith.mulf %193, %77 : vector<1x256xf32>
    %195 = arith.addf %187, %194 : vector<1x256xf32>
    %c62 = arith.constant 62 : index
    %196 = memref.load %arg1[%c62] : memref<98xf32, #tpu.memory_space<smem>>
    %197 = vector.broadcast %196 : f32 to vector<1x256xf32>
    %198 = arith.mulf %197, %79 : vector<1x256xf32>
    %199 = arith.addf %191, %198 : vector<1x256xf32>
    %200 = arith.addf %195, %199 : vector<1x256xf32>
    %cst_35 = arith.constant 0.000000e+00 : f32
    %201 = vector.broadcast %cst_35 : f32 to vector<1x32xf32>
    %202 = vector.extract_strided_slice %200 {offsets = [0, 0], sizes = [1, 224], strides = [1, 1]} : vector<1x256xf32> to vector<1x224xf32>
    %203 = tpu.concatenate %201, %202 in 1 : vector<1x32xf32>, vector<1x224xf32> -> vector<1x256xf32>
    %cst_36 = arith.constant 0.000000e+00 : f32
    %204 = vector.broadcast %cst_36 : f32 to vector<1x256xf32>
    %cst_37 = arith.constant 0.000000e+00 : f32
    %205 = vector.broadcast %cst_37 : f32 to vector<1x256xf32>
    %c14 = arith.constant 14 : index
    %206 = memref.load %arg1[%c14] : memref<98xf32, #tpu.memory_space<smem>>
    %207 = vector.broadcast %206 : f32 to vector<1x256xf32>
    %208 = arith.mulf %207, %17 : vector<1x256xf32>
    %209 = arith.addf %204, %208 : vector<1x256xf32>
    %c63 = arith.constant 63 : index
    %210 = memref.load %arg1[%c63] : memref<98xf32, #tpu.memory_space<smem>>
    %211 = vector.broadcast %210 : f32 to vector<1x256xf32>
    %212 = arith.mulf %211, %19 : vector<1x256xf32>
    %213 = arith.addf %205, %212 : vector<1x256xf32>
    %c15 = arith.constant 15 : index
    %214 = memref.load %arg1[%c15] : memref<98xf32, #tpu.memory_space<smem>>
    %215 = vector.broadcast %214 : f32 to vector<1x256xf32>
    %216 = arith.mulf %215, %29 : vector<1x256xf32>
    %217 = arith.addf %209, %216 : vector<1x256xf32>
    %c64 = arith.constant 64 : index
    %218 = memref.load %arg1[%c64] : memref<98xf32, #tpu.memory_space<smem>>
    %219 = vector.broadcast %218 : f32 to vector<1x256xf32>
    %220 = arith.mulf %219, %31 : vector<1x256xf32>
    %221 = arith.addf %213, %220 : vector<1x256xf32>
    %c16 = arith.constant 16 : index
    %222 = memref.load %arg1[%c16] : memref<98xf32, #tpu.memory_space<smem>>
    %223 = vector.broadcast %222 : f32 to vector<1x256xf32>
    %224 = arith.mulf %223, %41 : vector<1x256xf32>
    %225 = arith.addf %217, %224 : vector<1x256xf32>
    %c65 = arith.constant 65 : index
    %226 = memref.load %arg1[%c65] : memref<98xf32, #tpu.memory_space<smem>>
    %227 = vector.broadcast %226 : f32 to vector<1x256xf32>
    %228 = arith.mulf %227, %43 : vector<1x256xf32>
    %229 = arith.addf %221, %228 : vector<1x256xf32>
    %c17 = arith.constant 17 : index
    %230 = memref.load %arg1[%c17] : memref<98xf32, #tpu.memory_space<smem>>
    %231 = vector.broadcast %230 : f32 to vector<1x256xf32>
    %232 = arith.mulf %231, %3 : vector<1x256xf32>
    %233 = arith.addf %225, %232 : vector<1x256xf32>
    %c66 = arith.constant 66 : index
    %234 = memref.load %arg1[%c66] : memref<98xf32, #tpu.memory_space<smem>>
    %235 = vector.broadcast %234 : f32 to vector<1x256xf32>
    %236 = arith.mulf %235, %4 : vector<1x256xf32>
    %237 = arith.addf %229, %236 : vector<1x256xf32>
    %c18 = arith.constant 18 : index
    %238 = memref.load %arg1[%c18] : memref<98xf32, #tpu.memory_space<smem>>
    %239 = vector.broadcast %238 : f32 to vector<1x256xf32>
    %240 = arith.mulf %239, %53 : vector<1x256xf32>
    %241 = arith.addf %233, %240 : vector<1x256xf32>
    %c67 = arith.constant 67 : index
    %242 = memref.load %arg1[%c67] : memref<98xf32, #tpu.memory_space<smem>>
    %243 = vector.broadcast %242 : f32 to vector<1x256xf32>
    %244 = arith.mulf %243, %55 : vector<1x256xf32>
    %245 = arith.addf %237, %244 : vector<1x256xf32>
    %c19 = arith.constant 19 : index
    %246 = memref.load %arg1[%c19] : memref<98xf32, #tpu.memory_space<smem>>
    %247 = vector.broadcast %246 : f32 to vector<1x256xf32>
    %248 = arith.mulf %247, %65 : vector<1x256xf32>
    %249 = arith.addf %241, %248 : vector<1x256xf32>
    %c68 = arith.constant 68 : index
    %250 = memref.load %arg1[%c68] : memref<98xf32, #tpu.memory_space<smem>>
    %251 = vector.broadcast %250 : f32 to vector<1x256xf32>
    %252 = arith.mulf %251, %67 : vector<1x256xf32>
    %253 = arith.addf %245, %252 : vector<1x256xf32>
    %c20 = arith.constant 20 : index
    %254 = memref.load %arg1[%c20] : memref<98xf32, #tpu.memory_space<smem>>
    %255 = vector.broadcast %254 : f32 to vector<1x256xf32>
    %256 = arith.mulf %255, %77 : vector<1x256xf32>
    %257 = arith.addf %249, %256 : vector<1x256xf32>
    %c69 = arith.constant 69 : index
    %258 = memref.load %arg1[%c69] : memref<98xf32, #tpu.memory_space<smem>>
    %259 = vector.broadcast %258 : f32 to vector<1x256xf32>
    %260 = arith.mulf %259, %79 : vector<1x256xf32>
    %261 = arith.addf %253, %260 : vector<1x256xf32>
    %262 = arith.addf %257, %261 : vector<1x256xf32>
    %cst_38 = arith.constant 0.000000e+00 : f32
    %263 = vector.broadcast %cst_38 : f32 to vector<1x16xf32>
    %264 = vector.extract_strided_slice %262 {offsets = [0, 0], sizes = [1, 240], strides = [1, 1]} : vector<1x256xf32> to vector<1x240xf32>
    %265 = tpu.concatenate %263, %264 in 1 : vector<1x16xf32>, vector<1x240xf32> -> vector<1x256xf32>
    %cst_39 = arith.constant 0.000000e+00 : f32
    %266 = vector.broadcast %cst_39 : f32 to vector<1x256xf32>
    %cst_40 = arith.constant 0.000000e+00 : f32
    %267 = vector.broadcast %cst_40 : f32 to vector<1x256xf32>
    %c21 = arith.constant 21 : index
    %268 = memref.load %arg1[%c21] : memref<98xf32, #tpu.memory_space<smem>>
    %269 = vector.broadcast %268 : f32 to vector<1x256xf32>
    %270 = arith.mulf %269, %17 : vector<1x256xf32>
    %271 = arith.addf %266, %270 : vector<1x256xf32>
    %c70 = arith.constant 70 : index
    %272 = memref.load %arg1[%c70] : memref<98xf32, #tpu.memory_space<smem>>
    %273 = vector.broadcast %272 : f32 to vector<1x256xf32>
    %274 = arith.mulf %273, %19 : vector<1x256xf32>
    %275 = arith.addf %267, %274 : vector<1x256xf32>
    %c22 = arith.constant 22 : index
    %276 = memref.load %arg1[%c22] : memref<98xf32, #tpu.memory_space<smem>>
    %277 = vector.broadcast %276 : f32 to vector<1x256xf32>
    %278 = arith.mulf %277, %29 : vector<1x256xf32>
    %279 = arith.addf %271, %278 : vector<1x256xf32>
    %c71 = arith.constant 71 : index
    %280 = memref.load %arg1[%c71] : memref<98xf32, #tpu.memory_space<smem>>
    %281 = vector.broadcast %280 : f32 to vector<1x256xf32>
    %282 = arith.mulf %281, %31 : vector<1x256xf32>
    %283 = arith.addf %275, %282 : vector<1x256xf32>
    %c23 = arith.constant 23 : index
    %284 = memref.load %arg1[%c23] : memref<98xf32, #tpu.memory_space<smem>>
    %285 = vector.broadcast %284 : f32 to vector<1x256xf32>
    %286 = arith.mulf %285, %41 : vector<1x256xf32>
    %287 = arith.addf %279, %286 : vector<1x256xf32>
    %c72 = arith.constant 72 : index
    %288 = memref.load %arg1[%c72] : memref<98xf32, #tpu.memory_space<smem>>
    %289 = vector.broadcast %288 : f32 to vector<1x256xf32>
    %290 = arith.mulf %289, %43 : vector<1x256xf32>
    %291 = arith.addf %283, %290 : vector<1x256xf32>
    %c24 = arith.constant 24 : index
    %292 = memref.load %arg1[%c24] : memref<98xf32, #tpu.memory_space<smem>>
    %293 = vector.broadcast %292 : f32 to vector<1x256xf32>
    %294 = arith.mulf %293, %3 : vector<1x256xf32>
    %295 = arith.addf %287, %294 : vector<1x256xf32>
    %c73 = arith.constant 73 : index
    %296 = memref.load %arg1[%c73] : memref<98xf32, #tpu.memory_space<smem>>
    %297 = vector.broadcast %296 : f32 to vector<1x256xf32>
    %298 = arith.mulf %297, %4 : vector<1x256xf32>
    %299 = arith.addf %291, %298 : vector<1x256xf32>
    %c25 = arith.constant 25 : index
    %300 = memref.load %arg1[%c25] : memref<98xf32, #tpu.memory_space<smem>>
    %301 = vector.broadcast %300 : f32 to vector<1x256xf32>
    %302 = arith.mulf %301, %53 : vector<1x256xf32>
    %303 = arith.addf %295, %302 : vector<1x256xf32>
    %c74 = arith.constant 74 : index
    %304 = memref.load %arg1[%c74] : memref<98xf32, #tpu.memory_space<smem>>
    %305 = vector.broadcast %304 : f32 to vector<1x256xf32>
    %306 = arith.mulf %305, %55 : vector<1x256xf32>
    %307 = arith.addf %299, %306 : vector<1x256xf32>
    %c26 = arith.constant 26 : index
    %308 = memref.load %arg1[%c26] : memref<98xf32, #tpu.memory_space<smem>>
    %309 = vector.broadcast %308 : f32 to vector<1x256xf32>
    %310 = arith.mulf %309, %65 : vector<1x256xf32>
    %311 = arith.addf %303, %310 : vector<1x256xf32>
    %c75 = arith.constant 75 : index
    %312 = memref.load %arg1[%c75] : memref<98xf32, #tpu.memory_space<smem>>
    %313 = vector.broadcast %312 : f32 to vector<1x256xf32>
    %314 = arith.mulf %313, %67 : vector<1x256xf32>
    %315 = arith.addf %307, %314 : vector<1x256xf32>
    %c27 = arith.constant 27 : index
    %316 = memref.load %arg1[%c27] : memref<98xf32, #tpu.memory_space<smem>>
    %317 = vector.broadcast %316 : f32 to vector<1x256xf32>
    %318 = arith.mulf %317, %77 : vector<1x256xf32>
    %319 = arith.addf %311, %318 : vector<1x256xf32>
    %c76 = arith.constant 76 : index
    %320 = memref.load %arg1[%c76] : memref<98xf32, #tpu.memory_space<smem>>
    %321 = vector.broadcast %320 : f32 to vector<1x256xf32>
    %322 = arith.mulf %321, %79 : vector<1x256xf32>
    %323 = arith.addf %315, %322 : vector<1x256xf32>
    %324 = arith.addf %319, %323 : vector<1x256xf32>
    %cst_41 = arith.constant 0.000000e+00 : f32
    %325 = vector.broadcast %cst_41 : f32 to vector<1x256xf32>
    %cst_42 = arith.constant 0.000000e+00 : f32
    %326 = vector.broadcast %cst_42 : f32 to vector<1x256xf32>
    %c28 = arith.constant 28 : index
    %327 = memref.load %arg1[%c28] : memref<98xf32, #tpu.memory_space<smem>>
    %328 = vector.broadcast %327 : f32 to vector<1x256xf32>
    %329 = arith.mulf %328, %17 : vector<1x256xf32>
    %330 = arith.addf %325, %329 : vector<1x256xf32>
    %c77 = arith.constant 77 : index
    %331 = memref.load %arg1[%c77] : memref<98xf32, #tpu.memory_space<smem>>
    %332 = vector.broadcast %331 : f32 to vector<1x256xf32>
    %333 = arith.mulf %332, %19 : vector<1x256xf32>
    %334 = arith.addf %326, %333 : vector<1x256xf32>
    %c29 = arith.constant 29 : index
    %335 = memref.load %arg1[%c29] : memref<98xf32, #tpu.memory_space<smem>>
    %336 = vector.broadcast %335 : f32 to vector<1x256xf32>
    %337 = arith.mulf %336, %29 : vector<1x256xf32>
    %338 = arith.addf %330, %337 : vector<1x256xf32>
    %c78 = arith.constant 78 : index
    %339 = memref.load %arg1[%c78] : memref<98xf32, #tpu.memory_space<smem>>
    %340 = vector.broadcast %339 : f32 to vector<1x256xf32>
    %341 = arith.mulf %340, %31 : vector<1x256xf32>
    %342 = arith.addf %334, %341 : vector<1x256xf32>
    %c30 = arith.constant 30 : index
    %343 = memref.load %arg1[%c30] : memref<98xf32, #tpu.memory_space<smem>>
    %344 = vector.broadcast %343 : f32 to vector<1x256xf32>
    %345 = arith.mulf %344, %41 : vector<1x256xf32>
    %346 = arith.addf %338, %345 : vector<1x256xf32>
    %c79 = arith.constant 79 : index
    %347 = memref.load %arg1[%c79] : memref<98xf32, #tpu.memory_space<smem>>
    %348 = vector.broadcast %347 : f32 to vector<1x256xf32>
    %349 = arith.mulf %348, %43 : vector<1x256xf32>
    %350 = arith.addf %342, %349 : vector<1x256xf32>
    %c31 = arith.constant 31 : index
    %351 = memref.load %arg1[%c31] : memref<98xf32, #tpu.memory_space<smem>>
    %352 = vector.broadcast %351 : f32 to vector<1x256xf32>
    %353 = arith.mulf %352, %3 : vector<1x256xf32>
    %354 = arith.addf %346, %353 : vector<1x256xf32>
    %c80 = arith.constant 80 : index
    %355 = memref.load %arg1[%c80] : memref<98xf32, #tpu.memory_space<smem>>
    %356 = vector.broadcast %355 : f32 to vector<1x256xf32>
    %357 = arith.mulf %356, %4 : vector<1x256xf32>
    %358 = arith.addf %350, %357 : vector<1x256xf32>
    %c32 = arith.constant 32 : index
    %359 = memref.load %arg1[%c32] : memref<98xf32, #tpu.memory_space<smem>>
    %360 = vector.broadcast %359 : f32 to vector<1x256xf32>
    %361 = arith.mulf %360, %53 : vector<1x256xf32>
    %362 = arith.addf %354, %361 : vector<1x256xf32>
    %c81 = arith.constant 81 : index
    %363 = memref.load %arg1[%c81] : memref<98xf32, #tpu.memory_space<smem>>
    %364 = vector.broadcast %363 : f32 to vector<1x256xf32>
    %365 = arith.mulf %364, %55 : vector<1x256xf32>
    %366 = arith.addf %358, %365 : vector<1x256xf32>
    %c33 = arith.constant 33 : index
    %367 = memref.load %arg1[%c33] : memref<98xf32, #tpu.memory_space<smem>>
    %368 = vector.broadcast %367 : f32 to vector<1x256xf32>
    %369 = arith.mulf %368, %65 : vector<1x256xf32>
    %370 = arith.addf %362, %369 : vector<1x256xf32>
    %c82 = arith.constant 82 : index
    %371 = memref.load %arg1[%c82] : memref<98xf32, #tpu.memory_space<smem>>
    %372 = vector.broadcast %371 : f32 to vector<1x256xf32>
    %373 = arith.mulf %372, %67 : vector<1x256xf32>
    %374 = arith.addf %366, %373 : vector<1x256xf32>
    %c34 = arith.constant 34 : index
    %375 = memref.load %arg1[%c34] : memref<98xf32, #tpu.memory_space<smem>>
    %376 = vector.broadcast %375 : f32 to vector<1x256xf32>
    %377 = arith.mulf %376, %77 : vector<1x256xf32>
    %378 = arith.addf %370, %377 : vector<1x256xf32>
    %c83 = arith.constant 83 : index
    %379 = memref.load %arg1[%c83] : memref<98xf32, #tpu.memory_space<smem>>
    %380 = vector.broadcast %379 : f32 to vector<1x256xf32>
    %381 = arith.mulf %380, %79 : vector<1x256xf32>
    %382 = arith.addf %374, %381 : vector<1x256xf32>
    %383 = arith.addf %378, %382 : vector<1x256xf32>
    %cst_43 = arith.constant 0.000000e+00 : f32
    %384 = vector.broadcast %cst_43 : f32 to vector<1x16xf32>
    %385 = vector.extract_strided_slice %383 {offsets = [0, 16], sizes = [1, 240], strides = [1, 1]} : vector<1x256xf32> to vector<1x240xf32>
    %386 = tpu.concatenate %385, %384 in 1 : vector<1x240xf32>, vector<1x16xf32> -> vector<1x256xf32>
    %cst_44 = arith.constant 0.000000e+00 : f32
    %387 = vector.broadcast %cst_44 : f32 to vector<1x256xf32>
    %cst_45 = arith.constant 0.000000e+00 : f32
    %388 = vector.broadcast %cst_45 : f32 to vector<1x256xf32>
    %c35 = arith.constant 35 : index
    %389 = memref.load %arg1[%c35] : memref<98xf32, #tpu.memory_space<smem>>
    %390 = vector.broadcast %389 : f32 to vector<1x256xf32>
    %391 = arith.mulf %390, %17 : vector<1x256xf32>
    %392 = arith.addf %387, %391 : vector<1x256xf32>
    %c84 = arith.constant 84 : index
    %393 = memref.load %arg1[%c84] : memref<98xf32, #tpu.memory_space<smem>>
    %394 = vector.broadcast %393 : f32 to vector<1x256xf32>
    %395 = arith.mulf %394, %19 : vector<1x256xf32>
    %396 = arith.addf %388, %395 : vector<1x256xf32>
    %c36 = arith.constant 36 : index
    %397 = memref.load %arg1[%c36] : memref<98xf32, #tpu.memory_space<smem>>
    %398 = vector.broadcast %397 : f32 to vector<1x256xf32>
    %399 = arith.mulf %398, %29 : vector<1x256xf32>
    %400 = arith.addf %392, %399 : vector<1x256xf32>
    %c85 = arith.constant 85 : index
    %401 = memref.load %arg1[%c85] : memref<98xf32, #tpu.memory_space<smem>>
    %402 = vector.broadcast %401 : f32 to vector<1x256xf32>
    %403 = arith.mulf %402, %31 : vector<1x256xf32>
    %404 = arith.addf %396, %403 : vector<1x256xf32>
    %c37 = arith.constant 37 : index
    %405 = memref.load %arg1[%c37] : memref<98xf32, #tpu.memory_space<smem>>
    %406 = vector.broadcast %405 : f32 to vector<1x256xf32>
    %407 = arith.mulf %406, %41 : vector<1x256xf32>
    %408 = arith.addf %400, %407 : vector<1x256xf32>
    %c86 = arith.constant 86 : index
    %409 = memref.load %arg1[%c86] : memref<98xf32, #tpu.memory_space<smem>>
    %410 = vector.broadcast %409 : f32 to vector<1x256xf32>
    %411 = arith.mulf %410, %43 : vector<1x256xf32>
    %412 = arith.addf %404, %411 : vector<1x256xf32>
    %c38 = arith.constant 38 : index
    %413 = memref.load %arg1[%c38] : memref<98xf32, #tpu.memory_space<smem>>
    %414 = vector.broadcast %413 : f32 to vector<1x256xf32>
    %415 = arith.mulf %414, %3 : vector<1x256xf32>
    %416 = arith.addf %408, %415 : vector<1x256xf32>
    %c87 = arith.constant 87 : index
    %417 = memref.load %arg1[%c87] : memref<98xf32, #tpu.memory_space<smem>>
    %418 = vector.broadcast %417 : f32 to vector<1x256xf32>
    %419 = arith.mulf %418, %4 : vector<1x256xf32>
    %420 = arith.addf %412, %419 : vector<1x256xf32>
    %c39 = arith.constant 39 : index
    %421 = memref.load %arg1[%c39] : memref<98xf32, #tpu.memory_space<smem>>
    %422 = vector.broadcast %421 : f32 to vector<1x256xf32>
    %423 = arith.mulf %422, %53 : vector<1x256xf32>
    %424 = arith.addf %416, %423 : vector<1x256xf32>
    %c88 = arith.constant 88 : index
    %425 = memref.load %arg1[%c88] : memref<98xf32, #tpu.memory_space<smem>>
    %426 = vector.broadcast %425 : f32 to vector<1x256xf32>
    %427 = arith.mulf %426, %55 : vector<1x256xf32>
    %428 = arith.addf %420, %427 : vector<1x256xf32>
    %c40 = arith.constant 40 : index
    %429 = memref.load %arg1[%c40] : memref<98xf32, #tpu.memory_space<smem>>
    %430 = vector.broadcast %429 : f32 to vector<1x256xf32>
    %431 = arith.mulf %430, %65 : vector<1x256xf32>
    %432 = arith.addf %424, %431 : vector<1x256xf32>
    %c89 = arith.constant 89 : index
    %433 = memref.load %arg1[%c89] : memref<98xf32, #tpu.memory_space<smem>>
    %434 = vector.broadcast %433 : f32 to vector<1x256xf32>
    %435 = arith.mulf %434, %67 : vector<1x256xf32>
    %436 = arith.addf %428, %435 : vector<1x256xf32>
    %c41 = arith.constant 41 : index
    %437 = memref.load %arg1[%c41] : memref<98xf32, #tpu.memory_space<smem>>
    %438 = vector.broadcast %437 : f32 to vector<1x256xf32>
    %439 = arith.mulf %438, %77 : vector<1x256xf32>
    %440 = arith.addf %432, %439 : vector<1x256xf32>
    %c90 = arith.constant 90 : index
    %441 = memref.load %arg1[%c90] : memref<98xf32, #tpu.memory_space<smem>>
    %442 = vector.broadcast %441 : f32 to vector<1x256xf32>
    %443 = arith.mulf %442, %79 : vector<1x256xf32>
    %444 = arith.addf %436, %443 : vector<1x256xf32>
    %445 = arith.addf %440, %444 : vector<1x256xf32>
    %cst_46 = arith.constant 0.000000e+00 : f32
    %446 = vector.broadcast %cst_46 : f32 to vector<1x32xf32>
    %447 = vector.extract_strided_slice %445 {offsets = [0, 32], sizes = [1, 224], strides = [1, 1]} : vector<1x256xf32> to vector<1x224xf32>
    %448 = tpu.concatenate %447, %446 in 1 : vector<1x224xf32>, vector<1x32xf32> -> vector<1x256xf32>
    %cst_47 = arith.constant 0.000000e+00 : f32
    %449 = vector.broadcast %cst_47 : f32 to vector<1x256xf32>
    %cst_48 = arith.constant 0.000000e+00 : f32
    %450 = vector.broadcast %cst_48 : f32 to vector<1x256xf32>
    %c42 = arith.constant 42 : index
    %451 = memref.load %arg1[%c42] : memref<98xf32, #tpu.memory_space<smem>>
    %452 = vector.broadcast %451 : f32 to vector<1x256xf32>
    %453 = arith.mulf %452, %17 : vector<1x256xf32>
    %454 = arith.addf %449, %453 : vector<1x256xf32>
    %c91 = arith.constant 91 : index
    %455 = memref.load %arg1[%c91] : memref<98xf32, #tpu.memory_space<smem>>
    %456 = vector.broadcast %455 : f32 to vector<1x256xf32>
    %457 = arith.mulf %456, %19 : vector<1x256xf32>
    %458 = arith.addf %450, %457 : vector<1x256xf32>
    %c43 = arith.constant 43 : index
    %459 = memref.load %arg1[%c43] : memref<98xf32, #tpu.memory_space<smem>>
    %460 = vector.broadcast %459 : f32 to vector<1x256xf32>
    %461 = arith.mulf %460, %29 : vector<1x256xf32>
    %462 = arith.addf %454, %461 : vector<1x256xf32>
    %c92 = arith.constant 92 : index
    %463 = memref.load %arg1[%c92] : memref<98xf32, #tpu.memory_space<smem>>
    %464 = vector.broadcast %463 : f32 to vector<1x256xf32>
    %465 = arith.mulf %464, %31 : vector<1x256xf32>
    %466 = arith.addf %458, %465 : vector<1x256xf32>
    %c44 = arith.constant 44 : index
    %467 = memref.load %arg1[%c44] : memref<98xf32, #tpu.memory_space<smem>>
    %468 = vector.broadcast %467 : f32 to vector<1x256xf32>
    %469 = arith.mulf %468, %41 : vector<1x256xf32>
    %470 = arith.addf %462, %469 : vector<1x256xf32>
    %c93 = arith.constant 93 : index
    %471 = memref.load %arg1[%c93] : memref<98xf32, #tpu.memory_space<smem>>
    %472 = vector.broadcast %471 : f32 to vector<1x256xf32>
    %473 = arith.mulf %472, %43 : vector<1x256xf32>
    %474 = arith.addf %466, %473 : vector<1x256xf32>
    %c45 = arith.constant 45 : index
    %475 = memref.load %arg1[%c45] : memref<98xf32, #tpu.memory_space<smem>>
    %476 = vector.broadcast %475 : f32 to vector<1x256xf32>
    %477 = arith.mulf %476, %3 : vector<1x256xf32>
    %478 = arith.addf %470, %477 : vector<1x256xf32>
    %c94 = arith.constant 94 : index
    %479 = memref.load %arg1[%c94] : memref<98xf32, #tpu.memory_space<smem>>
    %480 = vector.broadcast %479 : f32 to vector<1x256xf32>
    %481 = arith.mulf %480, %4 : vector<1x256xf32>
    %482 = arith.addf %474, %481 : vector<1x256xf32>
    %c46 = arith.constant 46 : index
    %483 = memref.load %arg1[%c46] : memref<98xf32, #tpu.memory_space<smem>>
    %484 = vector.broadcast %483 : f32 to vector<1x256xf32>
    %485 = arith.mulf %484, %53 : vector<1x256xf32>
    %486 = arith.addf %478, %485 : vector<1x256xf32>
    %c95 = arith.constant 95 : index
    %487 = memref.load %arg1[%c95] : memref<98xf32, #tpu.memory_space<smem>>
    %488 = vector.broadcast %487 : f32 to vector<1x256xf32>
    %489 = arith.mulf %488, %55 : vector<1x256xf32>
    %490 = arith.addf %482, %489 : vector<1x256xf32>
    %c47 = arith.constant 47 : index
    %491 = memref.load %arg1[%c47] : memref<98xf32, #tpu.memory_space<smem>>
    %492 = vector.broadcast %491 : f32 to vector<1x256xf32>
    %493 = arith.mulf %492, %65 : vector<1x256xf32>
    %494 = arith.addf %486, %493 : vector<1x256xf32>
    %c96 = arith.constant 96 : index
    %495 = memref.load %arg1[%c96] : memref<98xf32, #tpu.memory_space<smem>>
    %496 = vector.broadcast %495 : f32 to vector<1x256xf32>
    %497 = arith.mulf %496, %67 : vector<1x256xf32>
    %498 = arith.addf %490, %497 : vector<1x256xf32>
    %c48 = arith.constant 48 : index
    %499 = memref.load %arg1[%c48] : memref<98xf32, #tpu.memory_space<smem>>
    %500 = vector.broadcast %499 : f32 to vector<1x256xf32>
    %501 = arith.mulf %500, %77 : vector<1x256xf32>
    %502 = arith.addf %494, %501 : vector<1x256xf32>
    %c97 = arith.constant 97 : index
    %503 = memref.load %arg1[%c97] : memref<98xf32, #tpu.memory_space<smem>>
    %504 = vector.broadcast %503 : f32 to vector<1x256xf32>
    %505 = arith.mulf %504, %79 : vector<1x256xf32>
    %506 = arith.addf %498, %505 : vector<1x256xf32>
    %507 = arith.addf %502, %506 : vector<1x256xf32>
    %cst_49 = arith.constant 0.000000e+00 : f32
    %508 = vector.broadcast %cst_49 : f32 to vector<1x48xf32>
    %509 = vector.extract_strided_slice %507 {offsets = [0, 48], sizes = [1, 208], strides = [1, 1]} : vector<1x256xf32> to vector<1x208xf32>
    %510 = tpu.concatenate %509, %508 in 1 : vector<1x208xf32>, vector<1x48xf32> -> vector<1x256xf32>
    %511 = arith.addf %141, %203 : vector<1x256xf32>
    %512 = arith.addf %265, %324 : vector<1x256xf32>
    %513 = arith.addf %511, %512 : vector<1x256xf32>
    %514 = arith.addf %386, %448 : vector<1x256xf32>
    %c0_50 = arith.constant 0 : index
    %515 = memref.load %arg2[%c0_50] : memref<1xf32, #tpu.memory_space<smem>>
    %516 = vector.broadcast %515 : f32 to vector<1x256xf32>
    %517 = arith.addf %510, %516 : vector<1x256xf32>
    %518 = arith.addf %514, %517 : vector<1x256xf32>
    %519 = arith.addf %513, %518 : vector<1x256xf32>
    %520 = arith.negf %519 : vector<1x256xf32>
    %521 = math.exp %520 : vector<1x256xf32>
    %cst_51 = arith.constant 1.000000e+00 : f32
    %522 = vector.broadcast %cst_51 : f32 to vector<1x256xf32>
    %523 = arith.addf %522, %521 : vector<1x256xf32>
    %524 = arith.divf %522, %523 : vector<1x256xf32>
    %525 = vector.shape_cast %524 : vector<1x256xf32> to vector<1x1x256xf32>
    %526 = vector.broadcast %525 : vector<1x1x256xf32> to vector<1x4x256xf32>
    %527 = arith.mulf %0, %526 : vector<1x4x256xf32>
    %c0_52 = arith.constant 0 : index
    %c0_53 = arith.constant 0 : index
    %c0_54 = arith.constant 0 : index
    %528 = vector.load %arg4[%c0_52, %c0_53, %c0_54] : memref<1x4x256xf32, #tpu.memory_space<vmem>>, vector<1x4x256xf32>
    tpu.vector_store %arg4[%c0_52, %c0_53, %c0_54], %527 {strides = array<i32>} : memref<1x4x256xf32, #tpu.memory_space<vmem>>, vector<1x4x256xf32>,
    return
  }
  func.func @transform_0(%arg0: i32) -> i32 {
    %c0_i32 = arith.constant 0 : i32
    %c0_i32_0 = arith.constant 0 : i32
    return %c0_i32 : i32
  }
  func.func @transform_1(%arg0: i32) -> i32 {
    %c0_i32 = arith.constant 0 : i32
    %c0_i32_0 = arith.constant 0 : i32
    return %c0_i32 : i32
  }
  func.func @transform_2(%arg0: i32) -> (i32, i32, i32) {
    %c0_i32 = arith.constant 0 : i32
    %c0_i32_0 = arith.constant 0 : i32
    %c0_i32_1 = arith.constant 0 : i32
    return %arg0, %c0_i32, %c0_i32_0 : i32, i32, i32
  }
  func.func @transform_3(%arg0: i32) -> (i32, i32, i32) {
    %c0_i32 = arith.constant 0 : i32
    %c0_i32_0 = arith.constant 0 : i32
    %c0_i32_1 = arith.constant 0 : i32
    return %arg0, %c0_i32, %c0_i32_0 : i32, i32, i32
  }
}

</mosaic_0001>

<bundles_post_ra>
// kernel: tpu_custom_call.1
= control target key start
LH: loop header
LB: loop body
LE: loop exit
PB: predicated region body
PF: predicated region fallthrough
CT: control target
= control target key end

     0   :  { %s2955_s0 = inlined_call_operand.vmem [shape: f32[98], index: 0, kind: input, shape index: {}]   ;;  %s2956_s1 = inlined_call_operand.<no memory space> [shape: f32[1], index: 1, kind: input, shape index: {}]   ;;  %s2957_s2 = inlined_call_operand.hbm [shape: f32[2,4,256], index: 2, kind: input, shape index: {}]   ;;  %s2958_s3 = inlined_call_operand.hbm [shape: f32[2,4,256], index: 3, kind: output, shape index: {}]  }
   0x1   :  { %3133 = sst [smem:[#allocation162_spill]] %s2955_s0 }
   0x2   :  { %3134 = sst [smem:[#allocation163_spill]] %s2957_s2 }
   0x3   :  { %3135 = sst [smem:[#allocation164_spill]] %s2958_s3 }
   0x4   :  { %8 = sst [smem:[#allocation2]] %s2956_s1 }
   0x5   :  { %9 = vsyncpa [#allocation6], 0 }
   0x6   :  { %10 = vsyncpa [#allocation4], 0 }
   0x7   :  { %12 = vsyncpa [#allocation4 + $0x1], 0 }
   0x8   :  { %13 = vsyncpa [#allocation5], 0 }
   0x9   :  { %15 = vsyncpa [#allocation5 + $0x1], 0  ;;  %s1543_s14 = smov 0   ;;  %s1545_s15 = smov 0  }
   0xa   :  { %s1547_s16 = smov 0   ;;  %s1549_s17 = smov 0  }
   0xb LB: > { %3136 = sst [smem:[#allocation12_spill]] %s1491_s14  ;;  %s1564_s1 = sadd.s32 4294967295, %s1503_s17   ;;  %s1503_s17 = sphi %s1549_s17, %s3621_s17   ;;  %s1499_s16 = sphi %s1547_s16, %s3624_s16   ;;  %s1495_s15 = sphi %s1545_s15, %s3623_s15   ;;  %s1491_s14 = sphi %s1543_s14, %s3622_s14  }
   0xc   : > { %3137 = sst [smem:[#allocation13_spill]] %s1495_s15  ;;  %s1192_s18 = sadd.s32 4294967294, %s1503_s17  }
   0xd   : > { %3138 = sst [smem:[#allocation14_spill]] %s1499_s16  ;;  %p83_p0 = scmp.ne.s32.totalorder %s1495_s15, %s1491_s14 }
   0xe   : > { %3139 = sst [smem:[#allocation15_spill]] %s1503_s17  ;;  %p2959_p1 = scmp.eq.s32.totalorder %s1564_s1, 0 }
   0xf   : > { %3140 = sst [smem:[#allocation16_spill]] %s1564_s1  ;;  %p113_p3 = scmp.eq.s32.totalorder %s1192_s18, 1 }
  0x10   : > { %p1573_p4 = por %p2959_p1, %p83_p0  ;;  %p1193_p5 = scmp.ge.s32.totalorder %s1503_s17, 1 }
  0x11   : > { %p1578_p6 = por %p113_p3, %p83_p0  ;;  %p120_p7 = scmp.lt.s32.totalorder %s1503_s17, 3 }
  0x12   : > { %s3141_s19 = scalar_select %p1573_p4, 1, 0 }
  0x13   : > { %s3142_s20 = scalar_select %p1578_p6, 1, 0 }
  0x14   : > { %s3144_s0 = sld [smem:[#allocation162_spill]]  ;;  %p1586_p8 = pnand %p1193_p5, %p120_p7 }
  0x15   : > { %3143 = sst [smem:[#allocation17_spill]] %s3142_s20  ;;  %s1594_s25 = sadd.s32 1, %s1503_s17  }
  0x16   : > { %p1317_p10 = pneg %p1586_p8  ;;  %3146 = sst [smem:[#allocation18_spill]] %s1594_s25 }
  0x17   : > { %s67_s27 = ssub.s32 %s1503_s17, %s1594_s25  ;;  %s70_s29 = sadd.s32 1, %s1499_s16 }
  0x18   : > { %p1598_p11 = pnand %p1317_p10, %p2959_p1  ;;  %p1604_p12 = scmp.eq.s32.totalorder %s67_s27, 0 }
  0x19   : > { %p77_p13 = scmp.ne.s32.totalorder %s1499_s16, %s1495_s15 }
  0x1a   : > { %s133_s23 = sshll.u32 %s3144_s0, 4  ;;  %p1390_p3 = pneg %p1598_p11  ;;  %s134_s23 = int_to_ptr.vmem [resolvable:$true] %s133_s23 }
  0x1b   : > { %s1388_s30 = scalar_lea.vmem %s134_s23, 16  ;;  %p1396_p9 = scmp.lt.s32.totalorder %s134_s23, %s134_s23 }
  0x1c   : > { %p1389_p0 = scmp.ne.s32.totalorder %s134_s23, %s1388_s30  ;;  %p1397_p2 = scmp.lt.s32.totalorder %s1388_s30, %s1388_s30 }
  0x1e   : > { %p1391_p5 = pnand %p1390_p3, %p1389_p0  ;;  %p1398_p10 = por %p1397_p2, %p1396_p9 }
  0x20   : > { %p1392_p7 = pneg %p1391_p5 }
  0x22   : > { %p1399_p1 = pnand %p1398_p10, %p1392_p7 }
  0x24   : > { %1402 = shalt.err (!%p1399_p1)
}
  0x25   : > { %s1505_s4 = smov [#allocation3]   ;;  %p78_p2 = scmp.eq.s32.totalorder %s1503_s17, 0 }
  0x26   : > { %1320 = dma.vmem_to_smem (!%p1598_p11), %s134_s23, 16, %s1505_s4, [#allocation6]  }
  0x27   : > { %s1618_s5 = scalar_select %p1604_p12, %s1499_s16, %s70_s29  }
  0x28   : > { %p3150_p1 = scmp.eq.s32.totalorder %s1564_s1, 1  ;;  %p1330_p0 = scmp.lt.s32.totalorder %s1503_s17, 2 }
  0x29   : > { %3149 = sst [smem:[#allocation19_spill]] %s1618_s5  ;;  %s147_s7 = sand.u32 1, %s1499_s16  }
  0x2a   : > { %p1626_p9 = por %p3150_p1, %p77_p13  ;;  %p79_p3 = por %p78_p2, %p77_p13 }
  0x2b   : > { %s1196_s8 = sshll.u32 %s147_s7, 3  ;;  %s1307_s9 = sshll.u32 %s1503_s17, 7 }
  0x2c   : > { %s3151_s6 = scalar_select %p1626_p9, 1, 0 }
  0x2d   : > { %s3153_s2 = sld [smem:[#allocation163_spill]]  ;;  %s151_s13 = scalar_lea.vmem [#allocation7], %s1196_s8 }
  0x2e   : > { %3152 = sst [smem:[#allocation20_spill]] %s3151_s6  ;;  %s159_s18 = sshll.u32 %s151_s13, 4  ;;  %s1645_s18 = int_to_ptr.vmem [resolvable:$true] %s159_s18 }
  0x2f   : > { %p1641_p11 = pnand %p1330_p0, %p79_p3  ;;  %s148_s22 = scalar_lea.sflag [#allocation4], %s147_s7 }
  0x31   : > { %p1405_p13 = pneg %p1641_p11 }
  0x33   : > { %s1639_s12 = scalar_lea.hbm %s3153_s2, %s1307_s9  ;;  %s1408_s28 = scalar_lea.hbm %s3153_s2, 256 }
  0x34   : > { %s1403_s23 = scalar_lea.hbm %s1639_s12, 128  ;;  %p1409_p10 = scmp.lt.u32.totalorder %s1639_s12, %s3153_s2 }
  0x35   : > { %p1404_p12 = scmp.ne.s32.totalorder %s1639_s12, %s1403_s23  ;;  %p1410_p2 = scmp.lt.u32.totalorder %s1408_s28, %s1403_s23 }
  0x36   : > { %p1412_p0 = scmp.lt.u32.totalorder %s1403_s23, %s1639_s12 }
  0x37   : > { %p1406_p5 = pnand %p1405_p13, %p1404_p12  ;;  %p1411_p1 = por %p1410_p2, %p1409_p10 }
  0x39   : > { %p1407_p7 = pneg %p1406_p5  ;;  %p1413_p3 = por %p1412_p0, %p1411_p1 }
  0x3b   : > { %p1414_p6 = pnand %p1413_p3, %p1407_p7 }
  0x3d   : > { %1417 = shalt.err (!%p1414_p6)
}
  0x3e   : > { %s1418_s4 = scalar_lea.vmem %s1645_s18, 128  ;;  %s1506_s7 = smov [#allocation7]  }
  0x3f   : > { %p1419_p12 = scmp.ne.s32.totalorder %s1645_s18, %s1418_s4  ;;  %s1423_s8 = sshll.u32 %s1506_s7, 4  ;;  %s1424_s8 = int_to_ptr.vmem [resolvable:$false] %s1423_s8 }
  0x40   : > { %s1425_s9 = scalar_lea.vmem %s1424_s8, 256  ;;  %p1426_p4 = scmp.lt.s32.totalorder %s1645_s18, %s1424_s8 }
  0x41   : > { %p1421_p5 = pnand %p1419_p12, %p1405_p13  ;;  %p1427_p10 = scmp.lt.s32.totalorder %s1425_s9, %s1418_s4 }
  0x43   : > { %p1422_p9 = pneg %p1421_p5  ;;  %p1428_p2 = por %p1427_p10, %p1426_p4 }
  0x45   : > { %p1429_p1 = pnand %p1428_p2, %p1422_p9 }
  0x47   : > { %1432 = shalt.err (!%p1429_p1)
}
  0x48   : > { %1324 = dma.hbm_to_vmem [thread:$0]  (!%p1641_p11), %s1639_s12, 128, %s1645_s18, %s148_s22  }
  0x49   : > { %168 = sbr.rel (%p1586_p8) target bundleno = 520 (0x208), region = 32 }
  0x50   : > { %p3155_p6 = scmp.eq.s32.totalorder %s1564_s1, 0 }
  0x52   : > { %1478 = dma.done.wait (%p3155_p6), [#allocation6], 16   ;;  %p3156_p13 = pmov %p3155_p6 }
  0x53   : > { %s1679_s10 = sand.u32 1, %s1495_s15   ;;  %p3159_p4 = scmp.ne.s32.totalorder %s3141_s19, 0 }
  0x54   : > { %1480 = vsyncadd (%p3156_p13), [#allocation6], 4294967280  ;;  %3157 = sst [smem:[#allocation21_spill]] %s1679_s10  ;;  %s2962_s11 = sshll.u32 %s1679_s10, 3 }
  0x55   : > { %s175_s13 = scalar_lea.sflag [#allocation4], %s1679_s10  ;;  %s1685_s12 = scalar_lea.vmem [#allocation7], %s2962_s11 }
  0x56   : > { %3158 = sst [smem:[#allocation22_spill]] %s1685_s12 }
  0x57   : > { %1482 = dma.done.wait (%p3159_p4), %s175_s13, 128  }
  0x58   : > { %1484 = vsyncadd (%p3159_p4), %s175_s13, 4294967168 }
  0x59   : > { %183 = sfence }
  0x5a   : > { %v202_v0 = vld [vmem:[%s1685_s12] sm:$0xff]  ;;  %vm206_vm0 = vcmask 1043456   ;;  %s1507_s19 = smov 2   ;;  %s1508_s24 = smov 3   ;;  %v3051_v32 = vlaneseq  ;;  %vm274_vm1 = vcmask 15360   ;;  %vm249_vm2 = vcmask 23552  }
  0x5b   : > { %v224_v1 = vsel %vm206_vm0, %v202_v0, -inf  ;;  %v207_v2 = vsel %vm206_vm0, %v202_v0, 0.0  ;;  %v204_v3 = vcombine.high %v202_v0, %v202_v0  ;;  %s1509_s18 = smov 1   ;;  %s1510_s21 = smov 127   ;;  %vm297_vm7 = vcmask 7168  }
  0x5c   : > { %v225_v4 = vrot.slane %v224_v1, 4  ;;  %v208_v5 = vrot.slane %v207_v2, 4  ;;  %s1511_s22 = smov 126   ;;  %s1512_s23 = smov 125   ;;  %v239_v33 = vand.u32 127, %v3051_v32  ;;  %vm320_vm10 = vcmask 1039360  }
  0x5d   : > { %v231_v6 = vsel %vm206_vm0, %v204_v3, -inf  ;;  %v214_v7 = vsel %vm206_vm0, %v204_v3, 0.0  ;;  %s1724_s26 = sld [smem:[#allocation3 + $0x32]]  ;;  %s1726_s27 = sld [smem:[#allocation3 + $0x39]]  ;;  %vm343_vm13 = vcmask 1031168   ;;  %vm366_vm0 = vcmask 1022976  }
  0x5e   : > { %v226_v8 = vmax.f32 %v224_v1, %v225_v4  ;;  %v209_v9 = vadd.f32 %v208_v5, %v207_v2  ;;  %v232_v10 = vrot.slane %v231_v6, 4  ;;  %v215_v11 = vrot.slane %v214_v7, 4  ;;  %s1728_s28 = sld [smem:[#allocation3 + $0x40]]  ;;  %s1730_s29 = sld [smem:[#allocation3 + $0x47]] }
  0x5f   : > { %s1732_s30 = sld [smem:[#allocation3 + $0x4e]]  ;;  %s1734_s4 = sld [smem:[#allocation3 + $0x55]]  ;;  %v240_v34 = vadd.s32 128, %v239_v33  ;;  %v1819_v35 = vand.u32 15, %v239_v33 }
  0x60   : > { %v227_v12 = vrot.slane %v226_v8, 2  ;;  %v210_v13 = vrot.slane %v209_v9, 2  ;;  %v233_v14 = vmax.f32 %v231_v6, %v232_v10  ;;  %v216_v15 = vadd.f32 %v215_v11, %v214_v7  ;;  %s1736_s7 = sld [smem:[#allocation3 + $0x5c]]  ;;  %s1738_s8 = sld [smem:[#allocation3 + $0x31]] }
  0x61   : > { %s1740_s9 = sld [smem:[#allocation3 + $0x38]]  ;;  %s1742_s13 = sld [smem:[#allocation3 + $0x3f]]  ;;  %v1828_v39 = vand.u32 15, %v240_v34  ;;  %vm287_vm3 = vcmp.ge.s32.totalorder %v1819_v35, 2  ;;  %vm264_vm4 = vcmp.ge.s32.totalorder %v1819_v35, 3  ;;  %vm310_vm8 = vcmp.ge.s32.totalorder %v1819_v35, 1 }
  0x62   : > { %v228_v16 = vmax.f32 %v226_v8, %v227_v12  ;;  %v211_v17 = vadd.f32 %v210_v13, %v209_v9  ;;  %v234_v18 = vrot.slane %v233_v14, 2  ;;  %v217_v19 = vrot.slane %v216_v15, 2  ;;  %s1756_s11 = sld [smem:[#allocation3 + $0xe]]  ;;  %s1758_s0 = sld [smem:[#allocation3 + $0x15]] }
  0x63   : > { %3160 = sst [smem:[#allocation23_spill]] %s1724_s26  ;;  %s1760_s2 = sld [smem:[#allocation3 + $0x1c]]  ;;  %v3090_v36 = vstv %s1724_s26  ;;  %v3093_v37 = vstv %s1726_s27  ;;  %vm265_vm5 = vcmp.ge.s32.totalorder %v1828_v39, 3  ;;  %vm288_vm6 = vcmp.ge.s32.totalorder %v1828_v39, 2 }
  0x64   : > { %v229_v20 = vrot.slane %v228_v16, 1  ;;  %v212_v21 = vrot.slane %v211_v17, 1  ;;  %v235_v22 = vmax.f32 %v233_v14, %v234_v18  ;;  %v218_v23 = vadd.f32 %v217_v19, %v216_v15  ;;  %3161 = sst [smem:[#allocation24_spill]] %s1726_s27  ;;  %s1762_s5 = sld [smem:[#allocation3 + $0x23]] }
  0x65   : > { %3162 = sst [smem:[#allocation25_spill]] %s1728_s28  ;;  %s1764_s16 = sld [smem:[#allocation3 + $0x2a]]  ;;  %v3103_v38 = vstv %s1728_s28  ;;  %v3096_v40 = vstv %s1730_s29  ;;  %v3097_v41 = vstv %s1732_s30  ;;  %v3100_v42 = vstv %s1734_s4 }
  0x66   : > { %v1692_v24 = vmax.f32 %v228_v16, %v229_v20  ;;  %v213_v25 = vadd.f32 %v212_v21, %v211_v17  ;;  %v236_v26 = vrot.slane %v235_v22, 1  ;;  %v219_v29 = vrot.slane %v218_v23, 1  ;;  %3163 = sst [smem:[#allocation26_spill]] %s1730_s29  ;;  %s1766_s15 = sld [smem:[#allocation3 + $0x1]] }
  0x67   : > { %3164 = sst [smem:[#allocation27_spill]] %s1732_s30  ;;  %s1768_s25 = sld [smem:[#allocation3 + $0x8]]  ;;  %v3108_v43 = vstv %s1736_s7  ;;  %v392_v44 = vstv %s1738_s8  ;;  %v3114_v45 = vstv %s1740_s9  ;;  %v3112_v46 = vstv %s1742_s13 }
  0x68   : > { %279 = vrot.lane.b32.xlu0 %v1692_v24, %s1507_s19  ;;  %256 = vrot.lane.b32.xlu1 %v1692_v24, %s1508_s24  ;;  %v1696_v27 = vmul.f32 0.25, %v213_v25  ;;  %v1698_v28 = vmax.f32 %v235_v22, %v236_v26  ;;  %v220_v30 = vadd.f32 %v219_v29, %v218_v23  ;;  %3165 = sst [smem:[#allocation28_spill]] %s1734_s4  ;;  %s1770_s17 = sld [smem:[#allocation3 + $0xf]]  ;;  %v3118_v53 = vstv %s1756_s11 }
  0x69   : > { %3166 = sst [smem:[#allocation29_spill]] %s1736_s7  ;;  %s1772_s20 = sld [smem:[#allocation3 + $0x16]]  ;;  %v3124_v54 = vstv %s1758_s0  ;;  %v3125_v55 = vstv %s1760_s2  ;;  %vm311_vm9 = vcmp.ge.s32.totalorder %v1828_v39, 1  ;;  %vm334_vm11 = vcmp.lt.s32.totalorder %v1828_v39, 15 }
  0x6a   : > { %v1704_v31 = vmul.f32 0.25, %v220_v30  ;;  %3167 = sst [smem:[#allocation30_spill]] %s1738_s8  ;;  %s1774_s14 = sld [smem:[#allocation3 + $0x1d]]  ;;  %v3131_v56 = vstv %s1762_s5  ;;  %vm333_vm12 = vcmp.lt.s32.totalorder %v1819_v35, 15  ;;  %vm357_vm14 = vcmp.lt.s32.totalorder %v1828_v39, 14 }
  0x6b   : > { %3168 = sst [smem:[#allocation31_spill]] %s1740_s9  ;;  %s1776_s3 = sld [smem:[#allocation3 + $0x24]]  ;;  %v3130_v57 = vstv %s1764_s16  ;;  %vm356_vm15 = vcmp.lt.s32.totalorder %v1819_v35, 14 }
  0x6c   : > { %245 = vrot.lane.b32.xlu0 %v1696_v27, %s1508_s24  ;;  %258 = vrot.lane.b32.xlu1 %v1698_v28, %s1508_s24  ;;  %3169 = sst [smem:[#allocation32_spill]] %s1742_s13  ;;  %s1778_s6 = sld [smem:[#allocation3 + $0x2b]] }
  0x6d   : > { %3176 = sst [smem:[#allocation39_spill]] %s1756_s11  ;;  %s1780_s12 = sld [smem:[#allocation3 + $0x2]] }
  0x6e   : > { %3177 = sst [smem:[#allocation40_spill]] %s1758_s0  ;;  %s1782_s10 = sld [smem:[#allocation3 + $0x9]] }
  0x6f   : > { %3178 = sst [smem:[#allocation41_spill]] %s1760_s2  ;;  %s1784_s1 = sld [smem:[#allocation3 + $0x10]] }
  0x70   : > { %270 = vrot.lane.b32.xlu0 %v1696_v27, %s1507_s19  ;;  %281 = vrot.lane.b32.xlu1 %v1698_v28, %s1507_s19  ;;  %3179 = sst [smem:[#allocation42_spill]] %s1762_s5  ;;  %s1840_s28 = sld [smem:[#allocation3 + $0x37]] }
  0x71   : > { %3180 = sst [smem:[#allocation43_spill]] %s1764_s16  ;;  %s1846_s27 = sld [smem:[#allocation3 + $0x3c]] }
  0x72   : > { %3181 = sst [smem:[#allocation44_spill]] %s1766_s15  ;;  %s1786_s15 = sld [smem:[#allocation3 + $0x17]] }
  0x73   : > { %3182 = sst [smem:[#allocation45_spill]] %s1768_s25  ;;  %s1788_s25 = sld [smem:[#allocation3 + $0x1e]] }
  0x74   : > { %293 = vrot.lane.b32.xlu0 %v1696_v27, %s1509_s18  ;;  %272 = vrot.lane.b32.xlu1 %v1704_v31, %s1507_s19  ;;  %s1744_s19 = sld [smem:[#allocation3 + $0x46]]  ;;  %3183 = sst [smem:[#allocation46_spill]] %s1770_s17 }
  0x75   : > { %3184 = sst [smem:[#allocation47_spill]] %s1772_s20  ;;  %s1790_s17 = sld [smem:[#allocation3 + $0x25]] }
  0x76   : > { %3185 = sst [smem:[#allocation48_spill]] %s1774_s14  ;;  %s1794_s14 = sld [smem:[#allocation3 + $0x33]] }
  0x77   : > { %3186 = sst [smem:[#allocation49_spill]] %s1776_s3  ;;  %s1792_s20 = sld [smem:[#allocation3 + $0x2c]] }
  0x78   : > { %295 = vrot.lane.b32.xlu1 %v1704_v31, %s1509_s18  ;;  %247 = vrot.lane.b32.xlu0 %v1704_v31, %s1508_s24  ;;  %s1746_s24 = sld [smem:[#allocation3 + $0x4d]]  ;;  %3187 = sst [smem:[#allocation50_spill]] %s1778_s6 }
  0x79   : > { %3188 = sst [smem:[#allocation51_spill]] %s1780_s12  ;;  %s1796_s3 = sld [smem:[#allocation3 + $0x3a]] }
  0x7a   : > { %3170 = sst [smem:[#allocation33_spill]] %s1744_s19  ;;  %s1799_s12 = sld [smem:[#allocation3 + $0x41]]  ;;  %v3109_v47 = vstv %s1744_s19 }
  0x7b   : > { %3189 = sst [smem:[#allocation52_spill]] %s1782_s10  ;;  %s1848_s30 = sld [smem:[#allocation3 + $0x11]] }
  0x7c   : > { %304 = vrot.lane.b32.xlu1 %v1698_v28, %s1509_s18  ;;  %302 = vrot.lane.b32.xlu0 %v1692_v24, %s1509_s18  ;;  %s1748_s18 = sld [smem:[#allocation3 + $0x54]]  ;;  %3190 = sst [smem:[#allocation53_spill]] %s1784_s1 }
  0x7d   : > { %3191 = sst [smem:[#allocation54_spill]] %s1786_s15  ;;  %s1801_s1 = sld [smem:[#allocation3 + $0x48]] }
  0x7e   : > { %3171 = sst [smem:[#allocation34_spill]] %s1746_s24  ;;  %s1803_s15 = sld [smem:[#allocation3 + $0x4f]]  ;;  %v3110_v48 = vstv %s1746_s24 }
  0x7f   : > { %3192 = sst [smem:[#allocation55_spill]] %s1788_s25  ;;  %s1805_s25 = sld [smem:[#allocation3 + $0x56]] }
  0x80   : > { %318 = vrot.lane.b32.xlu1 %v1704_v31, %s1510_s21  ;;  %316 = vrot.lane.b32.xlu0 %v1696_v27, %s1510_s21  ;;  %3193 = sst [smem:[#allocation56_spill]] %s1790_s17  ;;  %s1813_s17 = sld [smem:[#allocation3 + $0xa]] }
  0x81   : > { %3194 = sst [smem:[#allocation57_spill]] %s1792_s20  ;;  %s1872_s11 = sld [smem:[#allocation3 + $0x1f]]  ;;  %v616_v30 = vstv %s1848_s30 }
  0x82   : > { %3172 = sst [smem:[#allocation35_spill]] %s1748_s18  ;;  %s1807_s20 = sld [smem:[#allocation3 + $0x5d]]  ;;  %v3111_v49 = vstv %s1748_s18  ;;  %v1974_v33 = vmul.f32 %v616_v30, %v1696_v27  ;;  %v1993_v16 = vmul.f32 %v616_v30, %v1704_v31 }
  0x83   : > { %3195 = sst [smem:[#allocation58_spill]] %s1794_s14  ;;  %s1809_s14 = sld [smem:[#allocation3 + $0x3]] }
  0x84   : > { %327 = vrot.lane.b32.xlu1 %v1698_v28, %s1510_s21  ;;  %325 = vrot.lane.b32.xlu0 %v1692_v24, %s1510_s21  ;;  %s1750_s21 = sld [smem:[#allocation3 + $0x5b]]  ;;  %3196 = sst [smem:[#allocation59_spill]] %s1796_s3 }
  0x85   : > { %3197 = sst [smem:[#allocation60_spill]] %s1799_s12  ;;  %s1811_s3 = sld [smem:[#allocation3 + $0x34]] }
  0x86   : > { %3198 = sst [smem:[#allocation61_spill]] %s1801_s1  ;;  %s1815_s12 = sld [smem:[#allocation3 + $0x4]]  ;;  %v519_v11 = vstv %s1813_s17 }
  0x87   : > { %3199 = sst [smem:[#allocation62_spill]] %s1803_s15  ;;  %s1817_s1 = sld [smem:[#allocation3 + $0x35]]  ;;  %v1932_v23 = vmul.f32 %v519_v11, %v1696_v27  ;;  %v799_v18 = vstv %s1872_s11 }
  0x88   : > { %341 = vrot.lane.b32.xlu1 %v1704_v31, %s1511_s22  ;;  %339 = vrot.lane.b32.xlu0 %v1696_v27, %s1511_s22  ;;  %3200 = sst [smem:[#allocation63_spill]] %s1805_s25  ;;  %s1856_s9 = sld [smem:[#allocation3 + $0x3d]]  ;;  %v1996_v14 = vmul.f32 %v799_v18, %v1696_v27  ;;  %v2026_v13 = vmul.f32 %v799_v18, %v1704_v31 }
  0x89   : > { %3201 = sst [smem:[#allocation64_spill]] %s1807_s20  ;;  %s1821_s25 = sld [smem:[#allocation3 + $0x3b]]  ;;  %v422_v7 = vstv %s1809_s14 }
  0x8a   : > { %3173 = sst [smem:[#allocation36_spill]] %s1750_s21  ;;  %s1823_s20 = sld [smem:[#allocation3 + $0xb]]  ;;  %v3113_v50 = vstv %s1750_s21  ;;  %v1918_v19 = vmul.f32 %v422_v7, %v1696_v27  ;;  %v1929_v22 = vmul.f32 %v422_v7, %v1704_v31  ;;  %v1968_v7 = vmul.f32 %v519_v11, %v1704_v31  ;;  %3257 = vst [vmem:[#allocation91_spill] sm:$0xff] %v1996_v14  ;;  %3264 = vst [vmem:[#allocation98_spill] sm:$0xff] %v2026_v13 }
  0x8b   : > { %3206 = sst [smem:[#allocation69_spill]] %s1840_s28  ;;  %s1854_s28 = sld [smem:[#allocation3 + $0xc]]  ;;  %v428_v10 = vstv %s1811_s3 }
  0x8c   : > { %350 = vrot.lane.b32.xlu1 %v1698_v28, %s1511_s22  ;;  %348 = vrot.lane.b32.xlu0 %v1692_v24, %s1511_s22  ;;  %s1752_s22 = sld [smem:[#allocation3]]  ;;  %3202 = sst [smem:[#allocation65_spill]] %s1815_s12  ;;  %v1925_v20 = vmul.f32 %v428_v10, %v1692_v24  ;;  %v1940_v26 = vmul.f32 %v428_v10, %v1698_v28 }
  0x8d   : > { %3203 = sst [smem:[#allocation66_spill]] %s1817_s1  ;;  %s1830_s12 = sld [smem:[#allocation3 + $0x5]] }
  0x8e   : > { %s1832_s1 = sld [smem:[#allocation3 + $0x36]]  ;;  %3207 = sst [smem:[#allocation70_spill]] %s1846_s27 }
  0x8f   : > { %3214 = sst [smem:[#allocation72_spill]] %s1856_s9  ;;  %s1862_s27 = sld [smem:[#allocation3 + $0xd]]  ;;  %v525_v15 = vstv %s1821_s25 }
  0x90   : > { %364 = vrot.lane.b32.xlu1 %v1704_v31, %s1512_s23  ;;  %362 = vrot.lane.b32.xlu0 %v1696_v27, %s1512_s23  ;;  %3204 = sst [smem:[#allocation67_spill]] %s1823_s20  ;;  %s1838_s20 = sld [smem:[#allocation3 + $0x6]]  ;;  %v1943_v29 = vmul.f32 %v525_v15, %v1692_v24  ;;  %v1971_v32 = vmul.f32 %v525_v15, %v1698_v28 }
  0x91   : > { %3212 = sst [smem:[#allocation71_spill]] %s1854_s28  ;;  %s1864_s18 = sld [smem:[#allocation3 + $0x3e]] }
  0x92   : > { %3174 = sst [smem:[#allocation37_spill]] %s1752_s22  ;;  %v3119_v51 = vstv %s1752_s22  ;;  %s1870_s9 = sld [smem:[#allocation3 + $0x42]] }
  0x93   : > { %s1880_s16 = sld [smem:[#allocation3 + $0x43]]  ;;  %s1888_s26 = sld [smem:[#allocation3 + $0x44]] }
  0x94   : > { %373 = vrot.lane.b32.xlu1 %v1698_v28, %s1512_s23  ;;  %371 = vrot.lane.b32.xlu0 %v1692_v24, %s1512_s23  ;;  %s1754_s23 = sld [smem:[#allocation3 + $0x7]]  ;;  %s1886_s5 = sld [smem:[#allocation3 + $0x13]] }
  0x95   : > { %3217 = sst [smem:[#allocation73_spill]] %s1862_s27  ;;  %s1894_s8 = sld [smem:[#allocation3 + $0x14]] }
  0x96   : > { %3205 = sst [smem:[#allocation68_spill]] %s1838_s20  ;;  %s1896_s19 = sld [smem:[#allocation3 + $0x45]] }
  0x97   : > { %3218 = sst [smem:[#allocation74_spill]] %s1864_s18  ;;  %s1878_s18 = sld [smem:[#allocation3 + $0x12]] }
  0x98   : > { %s1902_s10 = sld [smem:[#allocation3 + $0x50]]  ;;  %s1910_s14 = sld [smem:[#allocation3 + $0x51]]  ;;  %v622_v21 = vstv %s1870_s9 }
  0x99   : > { %3226 = sst [smem:[#allocation76_spill]] %s1880_s16  ;;  %s1912_s24 = sld [smem:[#allocation3 + $0x21]]  ;;  %v1989_v11 = vmul.f32 %v622_v21, %v1692_v24  ;;  %v2006_v15 = vmul.f32 %v622_v21, %v1698_v28 }
  0x9a   : > { %3175 = sst [smem:[#allocation38_spill]] %s1754_s23  ;;  %v3115_v52 = vstv %s1754_s23  ;;  %s3243_s25 = sld [smem:[#allocation67_spill]] }
  0x9b   : > { %3229 = sst [smem:[#allocation77_spill]] %s1886_s5  ;;  %s1920_s3 = sld [smem:[#allocation3 + $0x52]]  ;;  %3258 = vst [vmem:[#allocation92_spill] sm:$0xff] %v2006_v15 }
  0x9c   : > { %3231 = sst [smem:[#allocation78_spill]] %s1888_s26  ;;  %s1904_s26 = sld [smem:[#allocation3 + $0x20]] }
  0x9d   : > { %3225 = sst [smem:[#allocation75_spill]] %s1878_s18  ;;  %s1922_s17 = sld [smem:[#allocation3 + $0x22]] }
  0x9e   : > { %3233 = sst [smem:[#allocation79_spill]] %s1894_s8  ;;  %s3245_s13 = sld [smem:[#allocation70_spill]]  ;;  %v805_v34 = vstv %s1902_s10 }
  0x9f   : > { %3235 = sst [smem:[#allocation80_spill]] %s1896_s19  ;;  %s1934_s15 = sld [smem:[#allocation3 + $0x53]]  ;;  %v2017_v10 = vmul.f32 %v805_v34, %v1692_v24  ;;  %v2029_v12 = vmul.f32 %v805_v34, %v1698_v28 }
  0xa0   : > { %3239 = sst [smem:[#allocation82_spill]] %s1910_s14  ;;  %s1946_s21 = sld [smem:[#allocation3 + $0x57]] }
  0xa1   : > { %3240 = sst [smem:[#allocation83_spill]] %s1912_s24  ;;  %s1936_s7 = sld [smem:[#allocation3 + $0x26]]  ;;  %3261 = vst [vmem:[#allocation95_spill] sm:$0xff] %v2017_v10  ;;  %3265 = vst [vmem:[#allocation99_spill] sm:$0xff] %v2029_v12 }
  0xa2   : > { %3237 = sst [smem:[#allocation81_spill]] %s1904_s26  ;;  %s1948_s29 = sld [smem:[#allocation3 + $0x27]] }
  0xa3   : > { %3241 = sst [smem:[#allocation84_spill]] %s1920_s3  ;;  %s3248_s4 = sld [smem:[#allocation72_spill]] }
  0xa4   : > { %3242 = sst [smem:[#allocation85_spill]] %s1922_s17  ;;  %s1954_s0 = sld [smem:[#allocation3 + $0x58]] }
  0xa5   : > { %3246 = sst [smem:[#allocation67_spill]] %s1934_s15  ;;  %s1956_s2 = sld [smem:[#allocation3 + $0x28]] }
  0xa6   : > { %s1962_s30 = sld [smem:[#allocation3 + $0x59]]  ;;  %s1964_s22 = sld [smem:[#allocation3 + $0x2d]]  ;;  %v902_v30 = vstv %s1946_s21 }
  0xa7   : > { %s1976_s20 = sld [smem:[#allocation3 + $0x29]]  ;;  %s1978_s9 = sld [smem:[#allocation3 + $0x5e]]  ;;  %v896_v21 = vstv %s1936_s7  ;;  %v2053_v6 = vmul.f32 %v902_v30, %v1692_v24  ;;  %v2065_v3 = vmul.f32 %v902_v30, %v1698_v28 }
  0xa8   : > { %3247 = sst [smem:[#allocation70_spill]] %s1948_s29  ;;  %s1986_s28 = sld [smem:[#allocation3 + $0x2e]]  ;;  %v2042_v17 = vmul.f32 %v896_v21, %v1696_v27  ;;  %v2045_v34 = vmul.f32 %v896_v21, %v1704_v31 }
  0xa9   : > { %s1984_s6 = sld [smem:[#allocation3 + $0x5a]]  ;;  %s1998_s27 = sld [smem:[#allocation3 + $0x18]]  ;;  %3272 = vst [vmem:[#allocation106_spill] sm:$0xff] %v2053_v6  ;;  %3274 = vst [vmem:[#allocation108_spill] sm:$0xff] %v2065_v3 }
  0xaa   : > { %3249 = sst [smem:[#allocation72_spill]] %s1954_s0  ;;  %s2000_s10 = sld [smem:[#allocation3 + $0x49]]  ;;  %3268 = vst [vmem:[#allocation102_spill] sm:$0xff] %v2042_v17  ;;  %3269 = vst [vmem:[#allocation103_spill] sm:$0xff] %v2045_v34 }
  0xab   : > { %3251 = sst [smem:[#allocation86_spill]] %s1956_s2  ;;  %s2008_s18 = sld [smem:[#allocation3 + $0x5f]] }
  0xac   : > { %3252 = sst [smem:[#allocation87_spill]] %s1962_s30  ;;  %s2010_s23 = sld [smem:[#allocation3 + $0x2f]]  ;;  %v993_v5 = vstv %s1964_s22 }
  0xad   : > { %3253 = sst [smem:[#allocation88_spill]] %s1976_s20  ;;  %s2020_s11 = sld [smem:[#allocation3 + $0x60]]  ;;  %v999_v9 = vstv %s1978_s9  ;;  %v2069_v1 = vmul.f32 %v993_v5, %v1696_v27  ;;  %v2079_v21 = vmul.f32 %v993_v5, %v1704_v31 }
  0xae   : > { %3256 = sst [smem:[#allocation90_spill]] %s1986_s28  ;;  %s2022_s5 = sld [smem:[#allocation3 + $0x30]]  ;;  %v2074_v0 = vmul.f32 %v999_v9, %v1692_v24  ;;  %v2085_v2 = vmul.f32 %v999_v9, %v1698_v28 }
  0xaf   : > { %3255 = sst [smem:[#allocation89_spill]] %s1984_s6  ;;  %s2032_s19 = sld [smem:[#allocation3 + $0x61]]  ;;  %3275 = vst [vmem:[#allocation109_spill] sm:$0xff] %v2069_v1  ;;  %v713_v8 = vstv %s1998_s27  ;;  %3277 = vst [vmem:[#allocation111_spill] sm:$0xff] %v2079_v21 }
  0xb0   : > { %s2038_s7 = sld [smem:[#allocation3 + $0x19]]  ;;  %s2048_s21 = sld [smem:[#allocation3 + $0x4a]]  ;;  %v719_v18 = vstv %s2000_s10  ;;  %3276 = vst [vmem:[#allocation110_spill] sm:$0xff] %v2074_v0  ;;  %3278 = vst [vmem:[#allocation112_spill] sm:$0xff] %v2085_v2  ;;  %v2089_v62 = vmul.f32 %v713_v8, %v1696_v27  ;;  %v2095_v30 = vmul.f32 %v713_v8, %v1704_v31 }
  0xb1   : > { %3259 = sst [smem:[#allocation93_spill]] %s2008_s18  ;;  %s2050_s24 = sld [smem:[#allocation3 + $0x1a]]  ;;  %v2092_v5 = vmul.f32 %v719_v18, %v1692_v24  ;;  %v2102_v27 = vmul.f32 %v719_v18, %v1698_v28 }
  0xb2   : > { %3260 = sst [smem:[#allocation94_spill]] %s2010_s23  ;;  %s2058_s15 = sld [smem:[#allocation3 + $0x4b]]  ;;  %3282 = vst [vmem:[#allocation113_spill] sm:$0xff] %v2089_v62  ;;  %3286 = vst [vmem:[#allocation115_spill] sm:$0xff] %v2095_v30 }
  0xb3   : > { %3262 = sst [smem:[#allocation96_spill]] %s2020_s11  ;;  %s3279_s22 = sld [smem:[#allocation23_spill]]  ;;  %3284 = vst [vmem:[#allocation114_spill] sm:$0xff] %v2092_v5  ;;  %3290 = vst [vmem:[#allocation116_spill] sm:$0xff] %v2102_v27 }
  0xb4   : > { %3263 = sst [smem:[#allocation97_spill]] %s2022_s5  ;;  %s3280_s27 = sld [smem:[#allocation24_spill]] }
  0xb5   : > { %3266 = sst [smem:[#allocation100_spill]] %s2032_s19  ;;  %s3281_s9 = sld [smem:[#allocation25_spill]] }
  0xb6   : > { %3267 = sst [smem:[#allocation101_spill]] %s2038_s7  ;;  %s3283_s10 = sld [smem:[#allocation26_spill]] }
  0xb7   : > { %3270 = sst [smem:[#allocation104_spill]] %s2048_s21  ;;  %s3285_s5 = sld [smem:[#allocation27_spill]] }
  0xb8   : > { %3271 = sst [smem:[#allocation105_spill]] %s2050_s24  ;;  %s3287_s11 = sld [smem:[#allocation28_spill]] }
  0xb9   : > { %3273 = sst [smem:[#allocation107_spill]] %s2058_s15  ;;  %s3289_s19 = sld [smem:[#allocation29_spill]] }
  0xba   : > { %s3291_s18 = sld [smem:[#allocation31_spill]]  ;;  %s3292_s28 = sld [smem:[#allocation32_spill]] }
  0xbb   : > { %s3293_s6 = sld [smem:[#allocation33_spill]]  ;;  %s3294_s20 = sld [smem:[#allocation34_spill]] }
  0xbc   : > { %s3295_s7 = sld [smem:[#allocation35_spill]]  ;;  %s3297_s30 = sld [smem:[#allocation36_spill]] }
  0xbd   : > { %s3299_s24 = sld [smem:[#allocation37_spill]]  ;;  %s3300_s21 = sld [smem:[#allocation38_spill]] }
  0xbe   : > { %s3302_s15 = sld [smem:[#allocation39_spill]]  ;;  %s3304_s2 = sld [smem:[#allocation40_spill]] }
  0xbf   : > { %s3305_s0 = sld [smem:[#allocation41_spill]]  ;;  %s3307_s29 = sld [smem:[#allocation42_spill]] }
  0xc0   : > { %s3308_s17 = sld [smem:[#allocation43_spill]]  ;;  %s3314_s3 = sld [smem:[#allocation44_spill]] }
  0xc1   : > { %s3316_s14 = sld [smem:[#allocation45_spill]]  ;;  %s3318_s26 = sld [smem:[#allocation46_spill]] }
  0xc2   : > { %s3321_s8 = sld [smem:[#allocation47_spill]]  ;;  %s3323_s16 = sld [smem:[#allocation48_spill]]  ;;  %v3329_v30 = vstv %s3297_s30 }
  0xc3   : > { %s3326_s23 = sld [smem:[#allocation49_spill]]  ;;  %s3351_s30 = sld [smem:[#allocation54_spill]] }
  0xc8   : > { %v3337_v2 = vstv %s3323_s16 }
  0xda   : > { %v280_v61 = vpop.permute.xlu0 %279  ;;  %v257_v60 = vpop.permute.xlu1 %256 }
  0xdb   : > { %v286_v9 = vsel %vm274_vm1, 0.0, %v280_v61  ;;  %v263_v25 = vsel %vm249_vm2, 0.0, %v257_v60 }
  0xdc   : > { %v291_v24 = vsel %vm287_vm3, %v286_v9, 0.0  ;;  %v268_v31 = vsel %vm264_vm4, %v263_v25, 0.0 }
  0xdd   : > { %v405_v63 = vmul.f32 %v3090_v36, %v291_v24  ;;  %v502_v59 = vmul.f32 %v3093_v37, %v291_v24  ;;  %v599_v28 = vmul.f32 %v3103_v38, %v291_v24  ;;  %v2119_v58 = vmul.f32 %v3096_v40, %v291_v24 }
  0xde   : > { %v782_v9 = vmul.f32 %v3097_v41, %v291_v24  ;;  %v2125_v25 = vmul.f32 %v3100_v42, %v291_v24  ;;  %v393_v4 = vmul.f32 %v392_v44, %v268_v31  ;;  %v2129_v8 = vpop.permute.xlu0 %245  ;;  %v259_v36 = vpop.permute.xlu1 %258  ;;  %v2133_v37 = vmul.f32 %v3108_v43, %v291_v24 }
  0xdf   : > { %3296 = vst [vmem:[#allocation117_spill] sm:$0xff] %v2119_v58  ;;  %v490_v18 = vmul.f32 %v3114_v45, %v268_v31  ;;  %v587_v40 = vmul.f32 %v3112_v46, %v268_v31  ;;  %v2141_v41 = vmul.f32 %v3109_v47, %v268_v31  ;;  %v770_v42 = vmul.f32 %v3110_v48, %v268_v31 }
  0xe0   : > { %3298 = vst [vmem:[#allocation118_spill] sm:$0xff] %v2125_v25  ;;  %3301 = vst [vmem:[#allocation119_spill] sm:$0xff] %v2133_v37  ;;  %v2147_v38 = vmul.f32 %v3111_v49, %v268_v31  ;;  %v253_v24 = vsel %vm249_vm2, 0.0, %v2129_v8  ;;  %v260_v43 = vsel %vm249_vm2, %v257_v60, %v259_v36  ;;  %v2155_v47 = vmul.f32 %v3113_v50, %v268_v31 }
  0xe1   : > { %3303 = vst [vmem:[#allocation120_spill] sm:$0xff] %v2141_v41  ;;  %v266_v48 = vsel %vm264_vm4, %v253_v24, 0.0  ;;  %v269_v49 = vsel %vm265_vm5, %v260_v43, 0.0  ;;  %v2161_v46 = vadd.f32 %v405_v63, %v393_v4  ;;  %v2175_v45 = vadd.f32 %v502_v59, %v490_v18 }
  0xe2   : > { %3306 = vst [vmem:[#allocation121_spill] sm:$0xff] %v2147_v38  ;;  %3309 = vst [vmem:[#allocation122_spill] sm:$0xff] %v2155_v47  ;;  %v2165_v36 = vmul.f32 %v3119_v51, %v266_v48  ;;  %v2169_v60 = vmul.f32 %v3115_v52, %v266_v48  ;;  %v2173_v31 = vmul.f32 %v3118_v53, %v266_v48  ;;  %v271_v50 = vpop.permute.xlu0 %270  ;;  %v282_v24 = vpop.permute.xlu1 %281  ;;  %v3315_v51 = vstv %s3291_s18  ;;  %s3328_s18 = sld [smem:[#allocation50_spill]] }
  0xe3   : > { %v2179_v43 = vmul.f32 %v3124_v54, %v266_v48  ;;  %v2183_v63 = vmul.f32 %v3125_v55, %v266_v48  ;;  %v2187_v4 = vmul.f32 %v3131_v56, %v266_v48  ;;  %v2191_v52 = vmul.f32 %v3130_v57, %v266_v48 }
  0xe4   : > { %v2195_v53 = vmul.f32 %v392_v44, %v269_v49  ;;  %v2199_v59 = vmul.f32 %v3315_v51, %v269_v49  ;;  %v3317_v18 = vstv %s3292_s28  ;;  %v3319_v55 = vstv %s3293_s6  ;;  %s3346_s6 = sld [smem:[#allocation52_spill]]  ;;  %s3348_s28 = sld [smem:[#allocation53_spill]] }
  0xe5   : > { %3310 = vst [vmem:[#allocation123_spill] sm:$0xff] %v2179_v43  ;;  %3311 = vst [vmem:[#allocation124_spill] sm:$0xff] %v2183_v63  ;;  %v2203_v54 = vmul.f32 %v3317_v18, %v269_v49  ;;  %v2207_v27 = vmul.f32 %v3319_v55, %v269_v49  ;;  %v3322_v48 = vstv %s3294_s20  ;;  %v3325_v44 = vstv %s3295_s7  ;;  %s3344_s20 = sld [smem:[#allocation51_spill]]  ;;  %s3353_s7 = sld [smem:[#allocation55_spill]] }
  0xe6   : > { %3312 = vst [vmem:[#allocation125_spill] sm:$0xff] %v2187_v4  ;;  %3313 = vst [vmem:[#allocation126_spill] sm:$0xff] %v2191_v52  ;;  %v2212_v57 = vmul.f32 %v3322_v48, %v269_v49  ;;  %v2216_v56 = vmul.f32 %v3325_v44, %v269_v49  ;;  %v278_v51 = vsel %vm274_vm1, 0.0, %v271_v50  ;;  %v283_v18 = vsel %vm274_vm1, %v280_v61, %v282_v24  ;;  %v294_v44 = vpop.permute.xlu0 %293  ;;  %v273_v5 = vpop.permute.xlu1 %272 }
  0xe7   : > { %3320 = vst [vmem:[#allocation127_spill] sm:$0xff] %v2207_v27  ;;  %v2222_v55 = vmul.f32 %v3329_v30, %v269_v49  ;;  %v289_v27 = vsel %vm287_vm3, %v278_v51, 0.0  ;;  %v292_v48 = vsel %vm288_vm6, %v283_v18, 0.0  ;;  %v2228_v62 = vadd.f32 %v599_v28, %v587_v40 }
  0xe8   : > { %3324 = vst [vmem:[#allocation128_spill] sm:$0xff] %v2212_v57  ;;  %3327 = vst [vmem:[#allocation129_spill] sm:$0xff] %v2216_v56  ;;  %v3331_v58 = vstv %s3314_s3  ;;  %v3332_v24 = vstv %s3316_s14  ;;  %v3333_v30 = vstv %s3318_s26  ;;  %v2242_v51 = vadd.f32 %v782_v9, %v770_v42 }
  0xe9   : > { %3330 = vst [vmem:[#allocation130_spill] sm:$0xff] %v2222_v55  ;;  %v2232_v61 = vmul.f32 %v3331_v58, %v289_v27  ;;  %v2236_v49 = vmul.f32 %v3332_v24, %v289_v27  ;;  %v2240_v41 = vmul.f32 %v3333_v30, %v289_v27  ;;  %v3335_v43 = vstv %s3321_s8 }
  0xea   : > { %3334 = vst [vmem:[#allocation131_spill] sm:$0xff] %v2242_v51  ;;  %v2246_v18 = vmul.f32 %v3335_v43, %v289_v27  ;;  %v2250_v21 = vmul.f32 %v3337_v2, %v289_v27  ;;  %v3339_v40 = vstv %s3326_s23  ;;  %v3341_v58 = vstv %s3328_s18  ;;  %v248_v37 = vpop.permute.xlu0 %247 }
  0xeb   : > { %v2254_v28 = vmul.f32 %v3339_v40, %v289_v27  ;;  %v2258_v55 = vmul.f32 %v3341_v58, %v289_v27  ;;  %v3343_v24 = vstv %s3279_s22  ;;  %v3345_v30 = vstv %s3280_s27  ;;  %s3356_s22 = sld [smem:[#allocation56_spill]]  ;;  %s3358_s27 = sld [smem:[#allocation57_spill]] }
  0xec   : > { %3336 = vst [vmem:[#allocation132_spill] sm:$0xff] %v2246_v18  ;;  %3338 = vst [vmem:[#allocation133_spill] sm:$0xff] %v2250_v21  ;;  %v2262_v0 = vmul.f32 %v3343_v24, %v292_v48  ;;  %v2266_v42 = vmul.f32 %v3345_v30, %v292_v48  ;;  %v3347_v9 = vstv %s3281_s9  ;;  %v3349_v2 = vstv %s3283_s10  ;;  %s1513_s9 = smov 48   ;;  %s3466_s10 = sld [smem:[#allocation80_spill]] }
  0xed   : > { %3340 = vst [vmem:[#allocation134_spill] sm:$0xff] %v2254_v28  ;;  %3342 = vst [vmem:[#allocation135_spill] sm:$0xff] %v2258_v55  ;;  %v2270_v43 = vmul.f32 %v3347_v9, %v292_v48  ;;  %v2274_v18 = vmul.f32 %v3349_v2, %v292_v48  ;;  %v3352_v40 = vstv %s3285_s5  ;;  %v3355_v58 = vstv %s3287_s11  ;;  %v296_v9 = vpop.permute.xlu1 %295  ;;  %s3397_s5 = sld [smem:[#allocation59_spill]] }
  0xee   : > { %v2278_v27 = vmul.f32 %v3352_v40, %v292_v48  ;;  %v2282_v24 = vmul.f32 %v3355_v58, %v292_v48  ;;  %v301_v30 = vsel %vm297_vm7, 0.0, %v294_v44  ;;  %v275_v1 = vsel %vm274_vm1, %v271_v50, %v273_v5  ;;  %s3458_s11 = sld [smem:[#allocation75_spill]] }
  0xef   : > { %3350 = vst [vmem:[#allocation136_spill] sm:$0xff] %v2274_v18  ;;  %v3359_v2 = vstv %s3289_s19  ;;  %v312_v40 = vsel %vm310_vm8, %v301_v30, 0.0  ;;  %v290_v58 = vsel %vm288_vm6, %v275_v1, 0.0  ;;  %v298_v47 = vsel %vm297_vm7, %v294_v44, %v296_v9  ;;  %s3432_s19 = sld [smem:[#allocation66_spill]] }
  0xf0   : > { %3354 = vst [vmem:[#allocation137_spill] sm:$0xff] %v2278_v27  ;;  %3357 = vst [vmem:[#allocation138_spill] sm:$0xff] %v2282_v24  ;;  %v2288_v18 = vmul.f32 %v3359_v2, %v292_v48  ;;  %v3361_v55 = vstv %s3344_s20  ;;  %v3362_v50 = vstv %s3346_s6  ;;  %v3363_v3 = vstv %s3348_s28 }
  0xf1   : > { %v2297_v52 = vmul.f32 %v3361_v55, %v312_v40  ;;  %v2301_v5 = vmul.f32 %v3362_v50, %v312_v40  ;;  %v2305_v48 = vmul.f32 %v3363_v3, %v312_v40  ;;  %v250_v30 = vsel %vm249_vm2, %v2129_v8, %v248_v37 }
  0xf2   : > { %3360 = vst [vmem:[#allocation139_spill] sm:$0xff] %v2288_v18  ;;  %v3364_v2 = vstv %s3351_s30  ;;  %v3366_v1 = vstv %s3353_s7  ;;  %v3368_v55 = vstv %s3356_s22  ;;  %v3370_v50 = vstv %s3358_s27 }
  0xf3   : > { %v2311_v18 = vmul.f32 %v3364_v2, %v312_v40  ;;  %v2315_v44 = vmul.f32 %v3366_v1, %v312_v40  ;;  %v2319_v9 = vmul.f32 %v3368_v55, %v312_v40  ;;  %v2323_v34 = vmul.f32 %v3370_v50, %v312_v40  ;;  %v305_v50 = vpop.permute.xlu1 %304 }
  0xf4   : > { %v3372_v37 = vstv %s3314_s3  ;;  %v3373_v8 = vstv %s3316_s14  ;;  %v3374_v1 = vstv %s3318_s26  ;;  %v3377_v24 = vstv %s3323_s16  ;;  %s3394_s16 = sld [smem:[#allocation58_spill]]  ;;  %s3401_s26 = sld [smem:[#allocation60_spill]] }
  0xf5   : > { %3365 = vst [vmem:[#allocation140_spill] sm:$0xff] %v2311_v18  ;;  %3367 = vst [vmem:[#allocation141_spill] sm:$0xff] %v2315_v44  ;;  %v2329_v3 = vmul.f32 %v3372_v37, %v290_v58  ;;  %v2333_v2 = vmul.f32 %v3373_v8, %v290_v58  ;;  %v2337_v55 = vmul.f32 %v3374_v1, %v290_v58  ;;  %v3375_v18 = vstv %s3321_s8  ;;  %s3403_s8 = sld [smem:[#allocation61_spill]]  ;;  %s3448_s3 = sld [smem:[#allocation74_spill]] }
  0xf6   : > { %3369 = vst [vmem:[#allocation142_spill] sm:$0xff] %v2319_v9  ;;  %3371 = vst [vmem:[#allocation143_spill] sm:$0xff] %v2323_v34  ;;  %v2341_v40 = vmul.f32 %v3375_v18, %v290_v58  ;;  %v303_v34 = vpop.permute.xlu0 %302  ;;  %v2345_v56 = vmul.f32 %v3377_v24, %v290_v58  ;;  %v3379_v37 = vstv %s3326_s23  ;;  %v313_v8 = vsel %vm311_vm9, %v298_v47, 0.0  ;;  %s3447_s14 = sld [smem:[#allocation69_spill]]  ;;  %s1514_s23 = smov 32  }
  0xf7   : > { %v2349_v6 = vmul.f32 %v3379_v37, %v290_v58  ;;  %v267_v1 = vsel %vm265_vm5, %v250_v30, 0.0  ;;  %v3381_v18 = vstv %s3328_s18  ;;  %v3383_v17 = vstv %s3344_s20  ;;  %s3475_s18 = sld [smem:[#allocation81_spill]]  ;;  %s3478_s20 = sld [smem:[#allocation82_spill]] }
  0xf8   : > { %3376 = vst [vmem:[#allocation144_spill] sm:$0xff] %v2341_v40  ;;  %3378 = vst [vmem:[#allocation145_spill] sm:$0xff] %v2345_v56  ;;  %v2357_v40 = vmul.f32 %v3381_v18, %v290_v58  ;;  %v2361_v9 = vmul.f32 %v3383_v17, %v313_v8  ;;  %v3384_v24 = vstv %s3346_s6  ;;  %v3385_v37 = vstv %s3348_s28  ;;  %s3479_s6 = sld [smem:[#allocation83_spill]]  ;;  %s3482_s28 = sld [smem:[#allocation84_spill]] }
  0xf9   : > { %3380 = vst [vmem:[#allocation146_spill] sm:$0xff] %v2349_v6  ;;  %v2365_v25 = vmul.f32 %v3384_v24, %v313_v8  ;;  %v2369_v6 = vmul.f32 %v3385_v37, %v313_v8  ;;  %v3386_v47 = vstv %s3351_s30  ;;  %v3388_v28 = vstv %s3353_s7  ;;  %s3486_s30 = sld [smem:[#allocation85_spill]]  ;;  %s3487_s7 = sld [smem:[#allocation67_spill]] }
  0xfa   : > { %3382 = vst [vmem:[#allocation147_spill] sm:$0xff] %v2357_v40  ;;  %v2373_v38 = vmul.f32 %v3386_v47, %v313_v8  ;;  %v2377_v30 = vmul.f32 %v3388_v28, %v313_v8  ;;  %v3390_v58 = vstv %s3356_s22  ;;  %v3392_v17 = vstv %s3358_s27  ;;  %s1515_s22 = smov 16   ;;  %s3505_s27 = sld [smem:[#allocation70_spill]] }
  0xfb   : > { %v2381_v18 = vmul.f32 %v3390_v58, %v313_v8  ;;  %v2385_v40 = vmul.f32 %v3392_v17, %v313_v8  ;;  %v3395_v24 = vstv %s3299_s24  ;;  %v3396_v47 = vstv %s3300_s21  ;;  %v319_v8 = vpop.permute.xlu1 %318  ;;  %v317_v17 = vpop.permute.xlu0 %316  ;;  %s3442_s24 = sld [smem:[#allocation71_spill]]  ;;  %s3464_s21 = sld [smem:[#allocation78_spill]] }
  0xfc   : > { %3387 = vst [vmem:[#allocation148_spill] sm:$0xff] %v2373_v38  ;;  %3389 = vst [vmem:[#allocation149_spill] sm:$0xff] %v2377_v30  ;;  %v388_v37 = vmul.f32 %v3395_v24, %v267_v1  ;;  %v2393_v38 = vmul.f32 %v3396_v47, %v267_v1  ;;  %v3398_v28 = vstv %s3302_s15  ;;  %v3399_v58 = vstv %s3304_s2  ;;  %s3408_s2 = sld [smem:[#allocation62_spill]]  ;;  %s3413_s15 = sld [smem:[#allocation64_spill]] }
  0xfd   : > { %3391 = vst [vmem:[#allocation150_spill] sm:$0xff] %v2381_v18  ;;  %3393 = vst [vmem:[#allocation151_spill] sm:$0xff] %v2385_v40  ;;  %v2397_v4 = vmul.f32 %v3398_v28, %v267_v1  ;;  %v2401_v18 = vmul.f32 %v3399_v58, %v267_v1  ;;  %v3402_v40 = vstv %s3305_s0  ;;  %v3405_v24 = vstv %s3307_s29  ;;  %s3410_s0 = sld [smem:[#allocation63_spill]]  ;;  %s3428_s29 = sld [smem:[#allocation65_spill]] }
  0xfe   : > { %v2405_v12 = vmul.f32 %v3402_v40, %v267_v1  ;;  %v2409_v13 = vmul.f32 %v3405_v24, %v267_v1  ;;  %v306_v47 = vsel %vm297_vm7, %v303_v34, %v305_v50  ;;  %v309_v28 = vsel %vm297_vm7, 0.0, %v303_v34 }
  0xff   : > { %3400 = vst [vmem:[#allocation152_spill] sm:$0xff] %v2401_v18  ;;  %v3407_v30 = vstv %s3308_s17  ;;  %v314_v18 = vsel %vm310_vm8, %v309_v28, 0.0  ;;  %v2421_v40 = vsel %vm311_vm9, %v306_v47, 0.0  ;;  %v324_v24 = vsel %vm320_vm10, %v319_v8, 0.0  ;;  %v326_v44 = vpop.permute.xlu0 %325  ;;  %s2595_s17 = sld [smem:[#allocation3 + $0x1b]] }
 0x100   : > { %3404 = vst [vmem:[#allocation153_spill] sm:$0xff] %v2405_v12  ;;  %3406 = vst [vmem:[#allocation154_spill] sm:$0xff] %v2409_v13  ;;  %v2415_v58 = vmul.f32 %v3407_v30, %v267_v1  ;;  %v3412_v50 = vstv %s3394_s16  ;;  %v3415_v1 = vstv %s3397_s5  ;;  %v3417_v47 = vstv %s3401_s26  ;;  %s3507_s16 = sld [smem:[#allocation72_spill]]  ;;  %s3508_s5 = sld [smem:[#allocation86_spill]] }
 0x101   : > { %3411 = vst [vmem:[#allocation156_spill] sm:$0xff] %v2421_v40  ;;  %v417_v13 = vmul.f32 %v3412_v50, %v314_v18  ;;  %v3414_v34 = vmov %v3412_v50  ;;  %v2431_v30 = vmul.f32 %v3415_v1, %v314_v18  ;;  %v3416_v28 = vmov %v3415_v1  ;;  %s3512_s26 = sld [smem:[#allocation87_spill]] }
 0x102   : > { %3409 = vst [vmem:[#allocation155_spill] sm:$0xff] %v2415_v58  ;;  %v418_v27 = vmul.f32 %v3414_v34, %v2421_v40  ;;  %v321_v58 = vsel %vm320_vm10, %v317_v17, %v319_v8  ;;  %v2437_v57 = vmul.f32 %v3416_v28, %v2421_v40  ;;  %v2441_v56 = vmul.f32 %v3417_v47, %v314_v18  ;;  %v328_v34 = vpop.permute.xlu1 %327 }
 0x103   : > { %v3418_v12 = vmov %v3417_v47  ;;  %v3419_v50 = vstv %s3403_s8  ;;  %v3423_v8 = vstv %s3408_s2  ;;  %v3425_v21 = vstv %s3410_s0  ;;  %s3515_s8 = sld [smem:[#allocation88_spill]]  ;;  %s3516_s2 = sld [smem:[#allocation89_spill]] }
 0x104   : > { %v2446_v14 = vmul.f32 %v3418_v12, %v2421_v40  ;;  %v2450_v10 = vmul.f32 %v3419_v50, %v314_v18  ;;  %v3421_v1 = vmov %v3419_v50  ;;  %v2459_v17 = vmul.f32 %v3423_v8, %v314_v18  ;;  %s1516_s0 = smov 112  }
 0x105   : > { %v2455_v51 = vmul.f32 %v3421_v1, %v2421_v40  ;;  %v3424_v28 = vmov %v3423_v8  ;;  %v2468_v63 = vmul.f32 %v3425_v21, %v314_v18  ;;  %v3427_v12 = vmov %v3425_v21 }
 0x106   : > { %3420 = vst [vmem:[#allocation157_spill] sm:$0xff] %v2450_v10  ;;  %v2464_v47 = vmul.f32 %v3424_v28, %v2421_v40  ;;  %v2473_v50 = vmul.f32 %v3427_v12, %v2421_v40  ;;  %v3430_v10 = vstv %s3413_s15  ;;  %v2481_v1 = vsel %vm334_vm11, %v324_v24, 0.0 }
 0x107   : > { %3422 = vst [vmem:[#allocation158_spill] sm:$0xff] %v2455_v51  ;;  %3426 = vst [vmem:[#allocation159_spill] sm:$0xff] %v2468_v63  ;;  %v2477_v15 = vmul.f32 %v3430_v10, %v314_v18  ;;  %v2485_v8 = vsel %vm333_vm12, %v321_v58, 0.0  ;;  %v332_v21 = vsel %vm320_vm10, %v328_v34, 0.0  ;;  %v329_v28 = vsel %vm320_vm10, %v326_v44, %v328_v34  ;;  %v342_v44 = vpop.permute.xlu1 %341  ;;  %v340_v34 = vpop.permute.xlu0 %339 }
 0x108   : > { %3429 = vst [vmem:[#allocation160_spill] sm:$0xff] %v2473_v50  ;;  %vm380_vm1 = vcmp.lt.s32.totalorder %v1828_v39, 13  ;;  %vm379_vm2 = vcmp.lt.s32.totalorder %v1819_v35, 13  ;;  %v401_v10 = vadd.f32 %v2232_v61, %v2165_v36  ;;  %v419_v18 = vadd.f32 %v417_v13, %v2161_v46 }
 0x109   : > { %3431 = vst [vmem:[#allocation161_spill] sm:$0xff] %v2477_v15  ;;  %v2496_v58 = vsel %vm334_vm11, %v332_v21, 0.0  ;;  %v2500_v24 = vsel %vm333_vm12, %v329_v28, 0.0  ;;  %v3433_v12 = vstv %s3428_s29  ;;  %v402_v15 = vadd.f32 %v2329_v3, %v388_v37 }
 0x10a   : > { %v435_v51 = vmul.f32 %v3433_v12, %v2485_v8  ;;  %v347_v36 = vsel %vm343_vm13, %v342_v44, 0.0  ;;  %v344_v46 = vsel %vm343_vm13, %v340_v34, %v342_v44  ;;  %v413_v13 = vadd.f32 %v2297_v52, %v401_v10 }
 0x10b   : > { %v431_v61 = vadd.f32 %v1925_v20, %v419_v18  ;;  %v2512_v21 = vsel %vm357_vm14, %v347_v36, 0.0  ;;  %v2516_v28 = vsel %vm356_vm15, %v344_v46, 0.0  ;;  %v3434_v3 = vstv %s3432_s19  ;;  %v351_v36 = vpop.permute.xlu1 %350  ;;  %v349_v46 = vpop.permute.xlu0 %348  ;;  %s3544_s19 = sld [smem:[#allocation93_spill]] }
 0x10c   : > { %v441_v37 = vmul.f32 %v3434_v3, %v2500_v24  ;;  %v408_v12 = vadd.f32 %v2262_v0, %v2195_v53  ;;  %v425_v44 = vadd.f32 %v1918_v19, %v413_v13  ;;  %v3435_v52 = vstv %s1830_s12  ;;  %s3440_s12 = sld [smem:[#allocation68_spill]] }
 0x10d   : > { %v447_v10 = vmul.f32 %v3435_v52, %v2516_v28  ;;  %v414_v20 = vadd.f32 %v2361_v9, %v402_v15  ;;  %v3436_v18 = vstv %s3428_s29  ;;  %v442_v63 = vmul.f32 %v3434_v3, %v2496_v58  ;;  %s3543_s29 = sld [smem:[#allocation90_spill]] }
 0x10e   : > { %v436_v34 = vmul.f32 %v3436_v18, %v2481_v1  ;;  %v443_v40 = vadd.f32 %v441_v37, %v431_v61  ;;  %v420_v50 = vadd.f32 %v418_v27, %v408_v12  ;;  %v3437_v53 = vmov %v3435_v52 }
 0x10f   : > { %v448_v0 = vmul.f32 %v3437_v53, %v2512_v21  ;;  %v355_v19 = vsel %vm343_vm13, %v351_v36, 0.0  ;;  %v352_v13 = vsel %vm343_vm13, %v349_v46, %v351_v36  ;;  %v437_v15 = vadd.f32 %v435_v51, %v425_v44  ;;  %v363_v46 = vpop.permute.xlu0 %362 }
 0x110   : > { %v426_v9 = vadd.f32 %v1929_v22, %v414_v20  ;;  %v2542_v52 = vsel %vm357_vm14, %v355_v19, 0.0  ;;  %v2546_v27 = vsel %vm356_vm15, %v352_v13, 0.0  ;;  %v432_v61 = vadd.f32 %v1940_v26, %v420_v50  ;;  %v365_v20 = vpop.permute.xlu1 %364 }
 0x111   : > { %v498_v37 = vadd.f32 %v2236_v49, %v2169_v60  ;;  %v449_v12 = vadd.f32 %v447_v10, %v437_v15  ;;  %v3438_v18 = vstv %s1832_s1  ;;  %v516_v26 = vadd.f32 %v2431_v30, %v2175_v45  ;;  %s3443_s1 = sld [smem:[#allocation73_spill]] }
 0x112   : > { %v453_v36 = vmul.f32 %v3438_v18, %v2546_v27  ;;  %v438_v51 = vadd.f32 %v436_v34, %v426_v9  ;;  %v3439_v22 = vmov %v3438_v18  ;;  %v444_v3 = vadd.f32 %v442_v63, %v432_v61 }
 0x113   : > { %v454_v44 = vmul.f32 %v3439_v22, %v2542_v52  ;;  %v510_v53 = vadd.f32 %v2301_v5, %v498_v37  ;;  %v3441_v60 = vstv %s3243_s25  ;;  %v370_v50 = vsel %vm366_vm0, %v365_v20, 0.0 }
 0x114   : > { %v532_v49 = vmul.f32 %v3441_v60, %v2485_v8  ;;  %v367_v10 = vsel %vm366_vm0, %v363_v46, %v365_v20  ;;  %v455_v34 = vadd.f32 %v453_v36, %v443_v40  ;;  %v450_v19 = vadd.f32 %v448_v0, %v438_v51  ;;  %v374_v18 = vpop.permute.xlu1 %373  ;;  %v372_v36 = vpop.permute.xlu0 %371 }
 0x115   : > { %v2567_v63 = vsel %vm380_vm1, %v370_v50, 0.0  ;;  %v2571_v5 = vsel %vm379_vm2, %v367_v10, 0.0  ;;  %v456_v45 = vadd.f32 %v454_v44, %v444_v3  ;;  %v522_v30 = vadd.f32 %v1932_v23, %v510_v53 }
 0x116   : > { %v3444_v13 = vstv %s3440_s12  ;;  %v528_v40 = vadd.f32 %v1943_v29, %v516_v26  ;;  %v3446_v0 = vstv %s3245_s13  ;;  %v3449_v22 = vstv %s3442_s24  ;;  %s3554_s12 = sld [smem:[#allocation96_spill]] }
 0x117   : > { %v459_v15 = vmul.f32 %v3444_v13, %v2571_v5  ;;  %v3445_v9 = vmov %v3444_v13  ;;  %v538_v37 = vmul.f32 %v3446_v0, %v2500_v24  ;;  %v534_v51 = vadd.f32 %v532_v49, %v522_v30 }
 0x118   : > { %v460_v61 = vmul.f32 %v3445_v9, %v2567_v63  ;;  %v544_v23 = vmul.f32 %v3449_v22, %v2516_v28  ;;  %v3450_v44 = vstv %s3248_s4  ;;  %v3451_v46 = vstv %s3443_s1 }
 0x119   : > { %v550_v20 = vmul.f32 %v3450_v44, %v2546_v27  ;;  %v556_v3 = vmul.f32 %v3451_v46, %v2571_v5  ;;  %v378_v29 = vsel %vm366_vm0, %v374_v18, 0.0  ;;  %v375_v53 = vsel %vm366_vm0, %v372_v36, %v374_v18 }
 0x11a   : > { %v461_v26 = vadd.f32 %v459_v15, %v449_v12  ;;  %v462_v60 = vadd.f32 %v460_v61, %v450_v19  ;;  %v2599_v49 = vsel %vm380_vm1, %v378_v29, 0.0  ;;  %v2603_v50 = vsel %vm379_vm2, %v375_v53, 0.0 }
 0x11b   : > { %v540_v10 = vadd.f32 %v538_v37, %v528_v40  ;;  %v546_v30 = vadd.f32 %v544_v23, %v534_v51  ;;  %v3452_v13 = vstv %s3447_s14  ;;  %v3454_v15 = vstv %s3448_s3  ;;  %s1517_s14 = smov 96   ;;  %s2831_s3 = sld [smem:[#allocation3 + $0x4c]] }
 0x11c   : > { %v465_v9 = vmul.f32 %v3452_v13, %v2603_v50  ;;  %v3453_v12 = vmov %v3452_v13  ;;  %v562_v39 = vmul.f32 %v3454_v15, %v2603_v50  ;;  %v499_v61 = vadd.f32 %v2333_v2, %v2393_v38 }
 0x11d   : > { %v466_v19 = vmul.f32 %v3453_v12, %v2599_v49  ;;  %v552_v35 = vadd.f32 %v550_v20, %v540_v10  ;;  %v558_v0 = vadd.f32 %v556_v3, %v546_v30  ;;  %v505_v40 = vadd.f32 %v2266_v42, %v2199_v59 }
 0x11e   : > { %v3455_v37 = vstv %s3243_s25  ;;  %v467_v36 = vadd.f32 %v465_v9, %v455_v34  ;;  %v511_v22 = vadd.f32 %v2365_v25, %v499_v61  ;;  %v3456_v23 = vstv %s3245_s13  ;;  %s3460_s25 = sld [smem:[#allocation76_spill]]  ;;  %s3462_s13 = sld [smem:[#allocation77_spill]] }
 0x11f   : > { %v533_v18 = vmul.f32 %v3455_v37, %v2481_v1  ;;  %v468_v51 = vadd.f32 %v466_v19, %v456_v45  ;;  %v539_v44 = vmul.f32 %v3456_v23, %v2496_v58  ;;  %v564_v46 = vadd.f32 %v562_v39, %v552_v35 }
 0x120   : > { %v517_v38 = vadd.f32 %v2437_v57, %v505_v40  ;;  %v3457_v2 = vstv %s3442_s24  ;;  %v3459_v59 = vstv %s3248_s4  ;;  %v469_v3 = vadd.f32 %v467_v36, %v461_v26  ;;  %s3465_s4 = sld [smem:[#allocation79_spill]]  ;;  %s3555_s24 = sld [smem:[#allocation97_spill]] }
 0x121   : > { %v545_v20 = vmul.f32 %v3457_v2, %v2512_v21  ;;  %v551_v42 = vmul.f32 %v3459_v59, %v2542_v52  ;;  %v470_v29 = vadd.f32 %v468_v51, %v462_v60  ;;  %v523_v34 = vadd.f32 %v1968_v7, %v511_v22 }
 0x122   : > { %v3461_v25 = vstv %s3443_s1  ;;  %v566_v53 = vadd.f32 %v564_v46, %v558_v0  ;;  %v529_v57 = vadd.f32 %v1971_v32, %v517_v38  ;;  %v3463_v10 = vmov %v3454_v15  ;;  %473 = vrot.lane.b32.xlu0 %v469_v3, %s1513_s9  ;;  %s3560_s1 = sld [smem:[#allocation100_spill]] }
 0x123   : > { %v557_v45 = vmul.f32 %v3461_v25, %v2567_v63  ;;  %v563_v30 = vmul.f32 %v3463_v10, %v2599_v49  ;;  %v595_v13 = vadd.f32 %v2240_v41, %v2173_v31  ;;  %475 = vrot.lane.b32.xlu1 %v470_v29, %s1513_s9  ;;  %v535_v7 = vadd.f32 %v533_v18, %v523_v34  ;;  %s2900_s9 = sld [smem:[#allocation2]] }
 0x124   : > { %v613_v26 = vadd.f32 %v2441_v56, %v2228_v62  ;;  %v3467_v60 = vstv %s3458_s11  ;;  %v749_v32 = vstv %s2595_s17  ;;  %v541_v12 = vadd.f32 %v539_v44, %v529_v57  ;;  %v3481_v57 = vld [vmem:[#allocation92_spill] sm:$0xff]  ;;  %s3574_s11 = sld [smem:[#allocation101_spill]]  ;;  %s3608_s17 = sld [smem:[#allocation16_spill]] }
 0x125   : > { %v629_v9 = vmul.f32 %v3467_v60, %v2485_v8  ;;  %v607_v19 = vadd.f32 %v2305_v48, %v595_v13  ;;  %v3468_v15 = vstv %s3460_s25  ;;  %v3469_v41 = vstv %s3462_s13  ;;  %v3484_v13 = vld [vmem:[#allocation124_spill] sm:$0xff]  ;;  %s3575_s25 = sld [smem:[#allocation104_spill]]  ;;  %s3579_s13 = sld [smem:[#allocation105_spill]] }
 0x126   : > { %v635_v39 = vmul.f32 %v3468_v15, %v2500_v24  ;;  %v641_v31 = vmul.f32 %v3469_v41, %v2516_v28  ;;  %v547_v61 = vadd.f32 %v545_v20, %v535_v7  ;;  %v625_v35 = vadd.f32 %v1989_v11, %v613_v26  ;;  %570 = vrot.lane.b32.xlu0 %v566_v53, %s1514_s23  ;;  %v3485_v7 = vld [vmem:[#allocation133_spill] sm:$0xff] }
 0x127   : > { %v3470_v0 = vstv %s3464_s21  ;;  %v3471_v62 = vstv %s3465_s4  ;;  %v553_v37 = vadd.f32 %v551_v42, %v541_v12  ;;  %v619_v48 = vadd.f32 %v1974_v33, %v607_v19  ;;  %v3488_v12 = vld [vmem:[#allocation131_spill] sm:$0xff]  ;;  %s3583_s21 = sld [smem:[#allocation107_spill]]  ;;  %s1518_s4 = smov 80  }
 0x128   : > { %v647_v56 = vmul.f32 %v3470_v0, %v2546_v27  ;;  %v653_v40 = vmul.f32 %v3471_v62, %v2571_v5  ;;  %v3472_v18 = vstv %s3466_s10  ;;  %v596_v51 = vadd.f32 %v2337_v55, %v2397_v4  ;;  %s3609_s10 = sld [smem:[#allocation21_spill]] }
 0x129   : > { %v659_v36 = vmul.f32 %v3472_v18, %v2603_v50  ;;  %v559_v11 = vadd.f32 %v557_v45, %v547_v61  ;;  %v637_v22 = vadd.f32 %v635_v39, %v625_v35  ;;  %v602_v23 = vadd.f32 %v2270_v43, %v2203_v54 }
 0x12a   : > { %v3473_v44 = vmov %v3467_v60  ;;  %v565_v33 = vadd.f32 %v563_v30, %v553_v37  ;;  %v631_v38 = vadd.f32 %v629_v9, %v619_v48  ;;  %v608_v2 = vadd.f32 %v2369_v6, %v596_v51  ;;  %v3495_v51 = vld [vmem:[#allocation91_spill] sm:$0xff] }
 0x12b   : > { %v630_v46 = vmul.f32 %v3473_v44, %v2481_v1  ;;  %v3474_v20 = vmov %v3468_v15  ;;  %v649_v4 = vadd.f32 %v647_v56, %v637_v22  ;;  %v614_v55 = vadd.f32 %v2446_v14, %v602_v23 }
 0x12c   : > { %v636_v59 = vmul.f32 %v3474_v20, %v2496_v58  ;;  %v3476_v42 = vmov %v3469_v41  ;;  %v3477_v54 = vmov %v3470_v0  ;;  %v567_v29 = vadd.f32 %v565_v33, %v559_v11  ;;  %v3490_v41 = vld [vmem:[#allocation141_spill] sm:$0xff] }
 0x12d   : > { %v642_v3 = vmul.f32 %v3476_v42, %v2512_v21  ;;  %v648_v43 = vmul.f32 %v3477_v54, %v2542_v52  ;;  %v643_v34 = vadd.f32 %v641_v31, %v631_v38  ;;  %v620_v25 = vadd.f32 %v1993_v16, %v608_v2  ;;  %v3498_v2 = vld [vmem:[#allocation153_spill] sm:$0xff] }
 0x12e   : > { %v3480_v6 = vmov %v3471_v62  ;;  %v661_v53 = vadd.f32 %v659_v36, %v649_v4  ;;  %v626_v10 = vadd.f32 %v3481_v57, %v614_v55  ;;  %v3483_v14 = vmov %v3472_v18  ;;  %572 = vrot.lane.b32.xlu1 %v567_v29, %s1514_s23  ;;  %v3499_v20 = vld [vmem:[#allocation145_spill] sm:$0xff]  ;;  %v3500_v4 = vld [vmem:[#allocation128_spill] sm:$0xff]  ;;  %s3610_s23 = sld [smem:[#allocation22_spill]] }
 0x12f   : > { %v654_v45 = vmul.f32 %v3480_v6, %v2567_v63  ;;  %v660_v30 = vmul.f32 %v3483_v14, %v2599_v49  ;;  %v778_v26 = vadd.f32 %v3485_v7, %v3484_v13  ;;  %v655_v60 = vadd.f32 %v653_v40, %v643_v34  ;;  %v3493_v40 = vld [vmem:[#allocation95_spill] sm:$0xff]  ;;  %v3501_v55 = vld [vmem:[#allocation137_spill] sm:$0xff] }
 0x130   : > { %v632_v9 = vadd.f32 %v630_v46, %v620_v25  ;;  %v796_v16 = vadd.f32 %v2459_v17, %v3488_v12  ;;  %v3489_v19 = vstv %s3475_s18  ;;  %v638_v39 = vadd.f32 %v636_v59, %v626_v10  ;;  %s3612_s18 = sld [smem:[#allocation20_spill]] }
 0x131   : > { %v812_v15 = vmul.f32 %v3489_v19, %v2485_v8  ;;  %v790_v31 = vadd.f32 %v3490_v41, %v778_v26  ;;  %v3491_v61 = vstv %s3478_s20  ;;  %v3492_v0 = vstv %s3479_s6  ;;  %s1308_s20 = sshll.u32 %s3608_s17, 7  ;;  %s3613_s6 = sshll.u32 %s3609_s10, 3 }
 0x132   : > { %v818_v35 = vmul.f32 %v3491_v61, %v2500_v24  ;;  %v824_v56 = vmul.f32 %v3492_v0, %v2516_v28  ;;  %v663_v62 = vadd.f32 %v661_v53, %v655_v60  ;;  %v644_v37 = vadd.f32 %v642_v3, %v632_v9  ;;  %v3504_v53 = vld [vmem:[#allocation149_spill] sm:$0xff] }
 0x133   : > { %v808_v48 = vadd.f32 %v3493_v40, %v796_v16  ;;  %v3494_v17 = vstv %s3482_s28  ;;  %v650_v36 = vadd.f32 %v648_v43, %v638_v39  ;;  %v802_v11 = vadd.f32 %v3495_v51, %v790_v31  ;;  %v3511_v16 = vld [vmem:[#allocation98_spill] sm:$0xff]  ;;  %s201_s28 = scalar_lea.vmem [#allocation8], %s3613_s6 }
 0x134   : > { %v830_v18 = vmul.f32 %v3494_v17, %v2546_v27  ;;  %v3496_v22 = vstv %s3486_s30  ;;  %v3497_v44 = vstv %s3487_s7  ;;  %667 = vrot.lane.b32.xlu0 %v663_v62, %s1515_s22  ;;  %v656_v33 = vadd.f32 %v654_v45, %v644_v37  ;;  %v3520_v62 = vld [vmem:[#allocation118_spill] sm:$0xff]  ;;  %s1110_s30 = sshll.u32 %s201_s28, 4  ;;  %s2913_s30 = int_to_ptr.vmem [resolvable:$true] %s1110_s30 }
 0x135   : > { %v836_v23 = vmul.f32 %v3496_v22, %v2571_v5  ;;  %v842_v46 = vmul.f32 %v3497_v44, %v2603_v50  ;;  %v820_v38 = vadd.f32 %v818_v35, %v808_v48  ;;  %v779_v59 = vadd.f32 %v3499_v20, %v3498_v2  ;;  %v3518_v35 = vld [vmem:[#allocation134_spill] sm:$0xff] }
 0x136   : > { %v785_v42 = vadd.f32 %v3501_v55, %v3500_v4  ;;  %v662_v3 = vadd.f32 %v660_v30, %v650_v36  ;;  %v814_v54 = vadd.f32 %v812_v15, %v802_v11  ;;  %v3502_v43 = vmov %v3489_v19  ;;  %v3513_v15 = vld [vmem:[#allocation99_spill] sm:$0xff]  ;;  %p3615_p9 = scmp.ne.s32.totalorder %s3612_s18, 0 }
 0x137   : > { %v813_v29 = vmul.f32 %v3502_v43, %v2481_v1  ;;  %v3503_v34 = vmov %v3491_v61  ;;  %v832_v6 = vadd.f32 %v830_v18, %v820_v38  ;;  %v791_v45 = vadd.f32 %v3504_v53, %v779_v59  ;;  %v3517_v61 = vld [vmem:[#allocation125_spill] sm:$0xff]  ;;  %v3532_v53 = vld [vmem:[#allocation146_spill] sm:$0xff] }
 0x138   : > { %v819_v25 = vmul.f32 %v3503_v34, %v2496_v58  ;;  %v797_v57 = vadd.f32 %v2464_v47, %v785_v42  ;;  %v3506_v10 = vmov %v3492_v0  ;;  %v664_v13 = vadd.f32 %v662_v3, %v656_v33  ;;  %v3525_v33 = vld [vmem:[#allocation159_spill] sm:$0xff]  ;;  %v3529_v43 = vld [vmem:[#allocation102_spill] sm:$0xff] }
 0x139   : > { %v825_v14 = vmul.f32 %v3506_v10, %v2512_v21  ;;  %v826_v30 = vadd.f32 %v824_v56, %v814_v54  ;;  %v3509_v7 = vmov %v3494_v17  ;;  %v3510_v60 = vmov %v3496_v22  ;;  %v3519_v56 = vld [vmem:[#allocation121_spill] sm:$0xff]  ;;  %v3530_v34 = vld [vmem:[#allocation106_spill] sm:$0xff]  ;;  %v3534_v10 = vld [vmem:[#allocation138_spill] sm:$0xff] }
 0x13a   : > { %v831_v26 = vmul.f32 %v3509_v7, %v2542_v52  ;;  %v837_v9 = vmul.f32 %v3510_v60, %v2567_v63  ;;  %v844_v12 = vadd.f32 %v842_v46, %v832_v6  ;;  %v803_v19 = vadd.f32 %v3511_v16, %v791_v45  ;;  %669 = vrot.lane.b32.xlu1 %v664_v13, %s1515_s22  ;;  %v3524_v46 = vld [vmem:[#allocation142_spill] sm:$0xff] }
 0x13b   : > { %v809_v39 = vadd.f32 %v3513_v15, %v797_v57  ;;  %v3514_v47 = vmov %v3497_v44  ;;  %v838_v31 = vadd.f32 %v836_v23, %v826_v30  ;;  %v875_v0 = vadd.f32 %v3518_v35, %v3517_v61  ;;  %v3531_v6 = vld [vmem:[#allocation154_spill] sm:$0xff]  ;;  %v3533_v57 = vld [vmem:[#allocation129_spill] sm:$0xff]  ;;  %v3539_v61 = vld [vmem:[#allocation156_spill] sm:$0xff] }
 0x13c   : > { %v843_v41 = vmul.f32 %v3514_v47, %v2599_v49  ;;  %v881_v37 = vadd.f32 %v3520_v62, %v3519_v56  ;;  %v3521_v40 = vstv %s3505_s27  ;;  %v815_v17 = vadd.f32 %v813_v29, %v803_v19  ;;  %v3537_v15 = vld [vmem:[#allocation150_spill] sm:$0xff]  ;;  %v3538_v47 = vld [vmem:[#allocation160_spill] sm:$0xff]  ;;  %s3614_s27 = sld [smem:[#allocation164_spill]] }
 0x13d   : > { %v909_v48 = vmul.f32 %v3521_v40, %v2485_v8  ;;  %v821_v18 = vadd.f32 %v819_v25, %v809_v39  ;;  %v3522_v36 = vstv %s3507_s16  ;;  %v3523_v11 = vstv %s3508_s5  ;;  %s1096_s5 = scalar_lea.sflag [#allocation5], %s3609_s10 }
 0x13e   : > { %v915_v51 = vmul.f32 %v3522_v36, %v2500_v24  ;;  %v921_v22 = vmul.f32 %v3523_v11, %v2516_v28  ;;  %v846_v44 = vadd.f32 %v844_v12, %v838_v31  ;;  %v887_v23 = vadd.f32 %v3524_v46, %v875_v0 }
 0x13f   : > { %v893_v38 = vadd.f32 %v3525_v33, %v881_v37  ;;  %v3526_v2 = vstv %s3512_s26  ;;  %v827_v59 = vadd.f32 %v825_v14, %v815_v17  ;;  %v833_v4 = vadd.f32 %v831_v26, %v821_v18  ;;  %v3550_v33 = vld [vmem:[#allocation126_spill] sm:$0xff]  ;;  %s1433_s26 = scalar_lea.vmem %s2913_s30, 128 }
 0x140   : > { %v927_v20 = vmul.f32 %v3526_v2, %v2546_v27  ;;  %v3527_v55 = vstv %s3515_s8  ;;  %v3528_v3 = vstv %s3516_s2  ;;  %850 = vrot.lane.b32.xlu0 %v846_v44, %s1516_s0  ;;  %v899_v29 = vadd.f32 %v3529_v43, %v887_v23  ;;  %p1434_p8 = scmp.ne.s32.totalorder %s2913_s30, %s1433_s26  ;;  %s1519_s8 = smov [#allocation8]  }
 0x141   : > { %v933_v42 = vmul.f32 %v3527_v55, %v2571_v5  ;;  %v939_v54 = vmul.f32 %v3528_v3, %v2603_v50  ;;  %v905_v25 = vadd.f32 %v3530_v34, %v893_v38  ;;  %v876_v45 = vadd.f32 %v3532_v53, %v3531_v6  ;;  %v3551_v38 = vld [vmem:[#allocation135_spill] sm:$0xff]  ;;  %s1437_s2 = sshll.u32 %s1519_s8, 4  ;;  %s1438_s2 = int_to_ptr.vmem [resolvable:$false] %s1437_s2 }
 0x142   : > { %v882_v14 = vadd.f32 %v3534_v10, %v3533_v57  ;;  %v839_v13 = vadd.f32 %v837_v9, %v827_v59  ;;  %v845_v30 = vadd.f32 %v843_v41, %v833_v4  ;;  %v3535_v7 = vmov %v3521_v40  ;;  %v3552_v59 = vld [vmem:[#allocation122_spill] sm:$0xff]  ;;  %v3553_v4 = vld [vmem:[#allocation119_spill] sm:$0xff]  ;;  %s2911_s16 = scalar_lea.hbm %s3614_s27, %s1308_s20  ;;  %p1435_p11 = pnand %p1434_p8, %p3615_p9 }
 0x143   : > { %v910_v26 = vmul.f32 %v3535_v7, %v2481_v1  ;;  %v3536_v60 = vmov %v3522_v36  ;;  %v911_v16 = vadd.f32 %v909_v48, %v899_v29  ;;  %v917_v19 = vadd.f32 %v915_v51, %v905_v25  ;;  %v3545_v48 = vld [vmem:[#allocation103_spill] sm:$0xff]  ;;  %v3546_v36 = vld [vmem:[#allocation108_spill] sm:$0xff]  ;;  %v3556_v29 = vld [vmem:[#allocation143_spill] sm:$0xff]  ;;  %p1440_p0 = scmp.lt.s32.totalorder %s2913_s30, %s1438_s2 }
 0x144   : > { %v916_v12 = vmul.f32 %v3536_v60, %v2496_v58  ;;  %v888_v39 = vadd.f32 %v3537_v15, %v876_v45  ;;  %v894_v31 = vadd.f32 %v3538_v47, %v882_v14  ;;  %v3540_v35 = vstv %s3413_s15  ;;  %s3548_s15 = sld [smem:[#allocation94_spill]]  ;;  %v3557_v25 = vld [vmem:[#allocation161_spill] sm:$0xff]  ;;  %v3563_v60 = vld [vmem:[#allocation110_spill] sm:$0xff]  ;;  %p1436_p7 = pneg %p1435_p11 }
 0x145   : > { %v989_v0 = vmul.f32 %v3540_v35, %v3539_v61  ;;  %v847_v56 = vadd.f32 %v845_v30, %v839_v13  ;;  %v3541_v9 = vmov %v3523_v11  ;;  %v3542_v62 = vmov %v3526_v2  ;;  %v3562_v7 = vld [vmem:[#allocation109_spill] sm:$0xff]  ;;  %v3566_v61 = vld [vmem:[#allocation155_spill] sm:$0xff] }
 0x146   : > { %v922_v41 = vmul.f32 %v3541_v9, %v2512_v21  ;;  %v928_v37 = vmul.f32 %v3542_v62, %v2542_v52  ;;  %v923_v40 = vadd.f32 %v921_v22, %v911_v16  ;;  %v929_v17 = vadd.f32 %v927_v20, %v917_v19  ;;  %v3567_v35 = vld [vmem:[#allocation147_spill] sm:$0xff]  ;;  %v3568_v9 = vld [vmem:[#allocation130_spill] sm:$0xff] }
 0x147   : > { %v900_v18 = vadd.f32 %v3545_v48, %v888_v39  ;;  %v906_v51 = vadd.f32 %v3546_v36, %v894_v31  ;;  %852 = vrot.lane.b32.xlu1 %v847_v56, %s1516_s0  ;;  %v3547_v11 = vmov %v3527_v55  ;;  %v3549_v46 = vmov %v3528_v3  ;;  %s1439_s0 = scalar_lea.vmem %s1438_s2, 256 }
 0x148   : > { %v934_v44 = vmul.f32 %v3547_v11, %v2567_v63  ;;  %v940_v23 = vmul.f32 %v3549_v46, %v2599_v49  ;;  %v972_v2 = vadd.f32 %v3551_v38, %v3550_v33  ;;  %v978_v22 = vadd.f32 %v3553_v4, %v3552_v59  ;;  %v3572_v11 = vld [vmem:[#allocation151_spill] sm:$0xff]  ;;  %p1441_p3 = scmp.lt.s32.totalorder %s1439_s0, %s1433_s26 }
 0x149   : > { %v935_v20 = vadd.f32 %v933_v42, %v923_v40  ;;  %v941_v55 = vadd.f32 %v939_v54, %v929_v17  ;;  %v912_v3 = vadd.f32 %v910_v26, %v900_v18  ;;  %v918_v43 = vadd.f32 %v916_v12, %v906_v51 }
 0x14a   : > { %v984_v34 = vadd.f32 %v3556_v29, %v972_v2  ;;  %v990_v6 = vadd.f32 %v3557_v25, %v978_v22  ;;  %v3558_v53 = vstv %s3543_s29  ;;  %v3559_v57 = vstv %s3544_s19  ;;  %p1442_p12 = por %p1441_p3, %p1440_p0 }
 0x14b   : > { %v1006_v45 = vmul.f32 %v3558_v53, %v2485_v8  ;;  %v1012_v10 = vmul.f32 %v3559_v57, %v2500_v24  ;;  %v943_v14 = vadd.f32 %v941_v55, %v935_v20  ;;  %v924_v13 = vadd.f32 %v922_v41, %v912_v3  ;;  %v3569_v41 = vld [vmem:[#allocation139_spill] sm:$0xff] }
 0x14c   : > { %v930_v30 = vadd.f32 %v928_v37, %v918_v43  ;;  %v3561_v42 = vstv %s3548_s15  ;;  %v996_v26 = vadd.f32 %v3562_v7, %v984_v34  ;;  %v1002_v12 = vadd.f32 %v3563_v60, %v990_v6  ;;  %v3578_v55 = vld [vmem:[#allocation111_spill] sm:$0xff]  ;;  %v3580_v43 = vld [vmem:[#allocation112_spill] sm:$0xff]  ;;  %p1443_p5 = pnand %p1442_p12, %p1436_p7 }
 0x14d   : > { %v1018_v54 = vmul.f32 %v3561_v42, %v2516_v28  ;;  %v3564_v16 = vstv %s3554_s12  ;;  %v3565_v15 = vstv %s3555_s24  ;;  %947 = vrot.lane.b32.xlu0 %v943_v14, %s1517_s14  ;;  %v936_v47 = vadd.f32 %v934_v44, %v924_v13  ;;  %v3586_v13 = vld [vmem:[#allocation120_spill] sm:$0xff] }
 0x14e   : > { %v1024_v19 = vmul.f32 %v3564_v16, %v2546_v27  ;;  %v1030_v39 = vmul.f32 %v3565_v15, %v2571_v5  ;;  %v942_v31 = vadd.f32 %v940_v23, %v930_v30  ;;  %v973_v56 = vadd.f32 %v3567_v35, %v3566_v61  ;;  %v3587_v30 = vld [vmem:[#allocation117_spill] sm:$0xff] }
 0x14f   : > { %v979_v62 = vadd.f32 %v3569_v41, %v3568_v9  ;;  %v1008_v37 = vadd.f32 %v1006_v45, %v996_v26  ;;  %v1014_v40 = vadd.f32 %v1012_v10, %v1002_v12  ;;  %v3570_v17 = vstv %s3560_s1  ;;  %v3585_v10 = vld [vmem:[#allocation132_spill] sm:$0xff] }
 0x150   : > { %v1036_v48 = vmul.f32 %v3570_v17, %v2603_v50  ;;  %v3571_v18 = vmov %v3558_v53  ;;  %v944_v51 = vadd.f32 %v942_v31, %v936_v47  ;;  %v985_v44 = vadd.f32 %v3572_v11, %v973_v56 }
 0x151   : > { %v1007_v36 = vmul.f32 %v3571_v18, %v2481_v1  ;;  %v991_v46 = vadd.f32 %v989_v0, %v979_v62  ;;  %v3573_v23 = vmov %v3559_v57  ;;  %v1020_v38 = vadd.f32 %v1018_v54, %v1008_v37  ;;  %v3584_v57 = vld [vmem:[#allocation123_spill] sm:$0xff]  ;;  %v3596_v18 = vld [vmem:[#allocation152_spill] sm:$0xff] }
 0x152   : > { %v1013_v33 = vmul.f32 %v3573_v23, %v2496_v58  ;;  %v1026_v2 = vadd.f32 %v1024_v19, %v1014_v40  ;;  %v3576_v59 = vmov %v3561_v42  ;;  %v3577_v22 = vmov %v3564_v16  ;;  %949 = vrot.lane.b32.xlu1 %v944_v51, %s1517_s14  ;;  %v3595_v40 = vld [vmem:[#allocation114_spill] sm:$0xff] }
 0x153   : > { %v1019_v4 = vmul.f32 %v3576_v59, %v2512_v21  ;;  %v1025_v20 = vmul.f32 %v3577_v22, %v2542_v52  ;;  %v997_v3 = vadd.f32 %v3578_v55, %v985_v44  ;;  %v1003_v29 = vadd.f32 %v3580_v43, %v991_v46  ;;  %v3598_v44 = vld [vmem:[#allocation127_spill] sm:$0xff]  ;;  %v3599_v46 = vld [vmem:[#allocation136_spill] sm:$0xff] }
 0x154   : > { %v3581_v0 = vmov %v3565_v15  ;;  %v3582_v25 = vmov %v3570_v17  ;;  %v1032_v53 = vadd.f32 %v1030_v39, %v1020_v38  ;;  %v1038_v45 = vadd.f32 %v1036_v48, %v1026_v2  ;;  %v3590_v15 = vld [vmem:[#allocation140_spill] sm:$0xff]  ;;  %v3591_v39 = vld [vmem:[#allocation157_spill] sm:$0xff] }
 0x155   : > { %v1031_v34 = vmul.f32 %v3581_v0, %v2567_v63  ;;  %v1037_v6 = vmul.f32 %v3582_v25, %v2599_v49  ;;  %v692_v14 = vadd.f32 %v3585_v10, %v3584_v57  ;;  %v698_v42 = vadd.f32 %v3587_v30, %v3586_v13  ;;  %v3600_v38 = vld [vmem:[#allocation148_spill] sm:$0xff] }
 0x156   : > { %v1009_v54 = vadd.f32 %v1007_v36, %v997_v3  ;;  %v1015_v7 = vadd.f32 %v1013_v33, %v1003_v29  ;;  %v3588_v26 = vstv %s3574_s11  ;;  %v3589_v12 = vstv %s3575_s25  ;;  %v3597_v36 = vld [vmem:[#allocation144_spill] sm:$0xff] }
 0x157   : > { %v726_v60 = vmul.f32 %v3588_v26, %v2485_v8  ;;  %v732_v16 = vmul.f32 %v3589_v12, %v2500_v24  ;;  %v1040_v19 = vadd.f32 %v1038_v45, %v1032_v53  ;;  %v704_v47 = vadd.f32 %v3590_v15, %v692_v14  ;;  %v3594_v24 = vld [vmem:[#allocation113_spill] sm:$0xff]  ;;  %v3606_v53 = vld [vmem:[#allocation116_spill] sm:$0xff] }
 0x158   : > { %v710_v31 = vadd.f32 %v3591_v39, %v698_v42  ;;  %v3592_v61 = vstv %s3579_s13  ;;  %v1021_v56 = vadd.f32 %v1019_v4, %v1009_v54  ;;  %v1027_v9 = vadd.f32 %v1025_v20, %v1015_v7  ;;  %v3602_v20 = vld [vmem:[#allocation158_spill] sm:$0xff] }
 0x159   : > { %v738_v35 = vmul.f32 %v3592_v61, %v2516_v28  ;;  %v3593_v41 = vstv %s3583_s21  ;;  %v750_v8 = vmul.f32 %v749_v32, %v2571_v5  ;;  %1044 = vrot.lane.b32.xlu0 %v1040_v19, %s1518_s4  ;;  %v716_v37 = vadd.f32 %v3594_v24, %v704_v47 }
 0x15a   : > { %v744_v62 = vmul.f32 %v3593_v41, %v2546_v27  ;;  %v722_v17 = vadd.f32 %v3595_v40, %v710_v31  ;;  %v755_v48 = vstv %s2831_s3  ;;  %v693_v28 = vadd.f32 %v3597_v36, %v3596_v18 }
 0x15b   : > { %v1033_v51 = vadd.f32 %v1031_v34, %v1021_v56  ;;  %v1039_v11 = vadd.f32 %v1037_v6, %v1027_v9  ;;  %v756_v27 = vmul.f32 %v755_v48, %v2603_v50  ;;  %v699_v5 = vadd.f32 %v3599_v46, %v3598_v44  ;;  %v3604_v50 = vld [vmem:[#allocation115_spill] sm:$0xff] }
 0x15c   : > { %v728_v23 = vadd.f32 %v726_v60, %v716_v37  ;;  %v734_v33 = vadd.f32 %v732_v16, %v722_v17  ;;  %v705_v2 = vadd.f32 %v3600_v38, %v693_v28  ;;  %v3601_v59 = vmov %v3588_v26 }
 0x15d   : > { %v727_v4 = vmul.f32 %v3601_v59, %v2481_v1  ;;  %v1041_v22 = vadd.f32 %v1039_v11, %v1033_v51  ;;  %v711_v55 = vadd.f32 %v3602_v20, %v699_v5  ;;  %v3603_v3 = vmov %v3589_v12 }
 0x15e   : > { %v733_v43 = vmul.f32 %v3603_v3, %v2496_v58  ;;  %v740_v29 = vadd.f32 %v738_v35, %v728_v23  ;;  %v746_v0 = vadd.f32 %v744_v62, %v734_v33  ;;  %v717_v34 = vadd.f32 %v3604_v50, %v705_v2 }
 0x15f   : > { %v3605_v25 = vmov %v3592_v61  ;;  %1046 = vrot.lane.b32.xlu1 %v1041_v22, %s1518_s4  ;;  %v723_v45 = vadd.f32 %v3606_v53, %v711_v55  ;;  %v3607_v57 = vmov %v3593_v41  ;;  %v751_v30 = vmul.f32 %v749_v32, %v2567_v63 }
 0x160   : > { %v739_v6 = vmul.f32 %v3605_v25, %v2512_v21  ;;  %v745_v10 = vmul.f32 %v3607_v57, %v2542_v52  ;;  %v752_v1 = vadd.f32 %v750_v8, %v740_v29  ;;  %v758_v14 = vadd.f32 %v756_v27, %v746_v0 }
 0x161   : > { %v729_v13 = vadd.f32 %v727_v4, %v717_v34  ;;  %v735_v58 = vadd.f32 %v733_v43, %v723_v45  ;;  %v757_v42 = vmul.f32 %v755_v48, %v2599_v49  ;;  %vm574_vm3 = vcmask 261120  }
 0x162   : > { %v760_v54 = vadd.f32 %v758_v14, %v752_v1  ;;  %vm671_vm4 = vcmask 130048   ;;  %vm477_vm5 = vcmask 392192   ;;  %vm951_vm6 = vcmask 785408   ;;  %v1387_v14 = vld [vmem:[%s3610_s23] sm:$0xff] }
 0x163   : > { %v741_v7 = vadd.f32 %v739_v6, %v729_v13  ;;  %v747_v26 = vadd.f32 %v745_v10, %v735_v58  ;;  %vm854_vm7 = vcmask 916480   ;;  %vm1048_vm8 = vcmask 654336  }
 0x164   : > { %v1062_v62 = vstv %s2900_s9  ;;  %v3611_v34 = vlaneseq }
 0x165   : > { %v753_v60 = vadd.f32 %v751_v30, %v741_v7  ;;  %v759_v21 = vadd.f32 %v757_v42, %v747_v26 }
 0x166   : > { %v1082_v25 = vshrl.u32 %v3611_v34, 7 }
 0x167   : > { %v761_v12 = vadd.f32 %v759_v21, %v753_v60 }
 0x168   : > { %v1083_v6 = vsub.s32 0, %v1082_v25 }
 0x194   : > { %v474_v16 = vpop.permute.xlu0 %473 }
 0x195   : > { %v476_v19 = vpop.permute.xlu1 %475  ;;  %v481_v8 = vsel %vm477_vm5, 0.0, %v474_v16 }
 0x196   : > { %v478_v24 = vsel %vm477_vm5, %v474_v16, %v476_v19 }
 0x198   : > { %v571_v15 = vpop.permute.xlu0 %570 }
 0x199   : > { %v578_v32 = vsel %vm574_vm3, 0.0, %v571_v15 }
 0x19a   : > { %v1053_v17 = vadd.f32 %v578_v32, %v481_v8 }
 0x1a0   : > { %v573_v47 = vpop.permute.xlu1 %572 }
 0x1a1   : > { %v575_v35 = vsel %vm574_vm3, %v571_v15, %v573_v47 }
 0x1a2   : > { %v1054_v48 = vadd.f32 %v575_v35, %v478_v24 }
 0x1a6   : > { %v668_v52 = vpop.permute.xlu0 %667 }
 0x1a7   : > { %v675_v56 = vsel %vm671_vm4, 0.0, %v668_v52 }
 0x1a8   : > { %v1055_v18 = vadd.f32 %v760_v54, %v675_v56 }
 0x1aa   : > { %v1057_v38 = vadd.f32 %v1055_v18, %v1053_v17 }
 0x1ac   : > { %v670_v39 = vpop.permute.xlu1 %669 }
 0x1ad   : > { %v672_v9 = vsel %vm671_vm4, %v668_v52, %v670_v39 }
 0x1ae   : > { %v1056_v36 = vadd.f32 %v761_v12, %v672_v9 }
 0x1b0   : > { %v1058_v2 = vadd.f32 %v1056_v36, %v1054_v48 }
 0x1b2   : > { %v851_v31 = vpop.permute.xlu0 %850 }
 0x1b9   : > { %v853_v61 = vpop.permute.xlu1 %852 }
 0x1ba   : > { %v855_v51 = vsel %vm854_vm7, %v851_v31, %v853_v61  ;;  %v858_v11 = vsel %vm854_vm7, %v853_v61, 0.0 }
 0x1bf   : > { %v948_v63 = vpop.permute.xlu0 %947 }
 0x1c4   : > { %v950_v49 = vpop.permute.xlu1 %949 }
 0x1c5   : > { %v952_v37 = vsel %vm951_vm6, %v948_v63, %v950_v49  ;;  %v955_v40 = vsel %vm951_vm6, %v950_v49, 0.0 }
 0x1c6   : > { %v1059_v46 = vadd.f32 %v952_v37, %v855_v51  ;;  %v1060_v5 = vadd.f32 %v955_v40, %v858_v11 }
 0x1cb   : > { %v1045_v41 = vpop.permute.xlu0 %1044 }
 0x1d1   : > { %v1047_v28 = vpop.permute.xlu1 %1046 }
 0x1d2   : > { %v1049_v27 = vsel %vm1048_vm8, %v1045_v41, %v1047_v28  ;;  %v1052_v44 = vsel %vm1048_vm8, %v1047_v28, 0.0 }
 0x1d3   : > { %v1063_v23 = vadd.f32 %v1062_v62, %v1049_v27  ;;  %v1064_v33 = vadd.f32 %v1062_v62, %v1052_v44 }
 0x1d5   : > { %v1065_v59 = vadd.f32 %v1063_v23, %v1059_v46  ;;  %v1066_v4 = vadd.f32 %v1064_v33, %v1060_v5 }
 0x1d7   : > { %v1067_v22 = vadd.f32 %v1065_v59, %v1057_v38  ;;  %v1068_v20 = vadd.f32 %v1066_v4, %v1058_v2 }
 0x1d9   : > { %v1300_v55 = vmul.f32 -1.442695, %v1067_v22  ;;  %v1301_v3 = vmul.f32 -1.442695, %v1068_v20 }
 0x1db   : > { %1379 = vpow2.f32 %v1300_v55 }
 0x1dc   : > { %1381 = vpow2.f32 %v1301_v3 }
 0x1e5   : > { %v1380_v43 = vpop.eup %1379 }
 0x1e6   : > { %v1382_v29 = vpop.eup %1381  ;;  %v1075_v0 = vadd.f32 1.0, %v1380_v43 }
 0x1e7   : > { %v1076_v50 = vadd.f32 1.0, %v1382_v29 }
 0x1e8   : > { %1383 = vrcp.f32 %v1075_v0 }
 0x1e9   : > { %1385 = vrcp.f32 %v1076_v50 }
 0x1f2   : > { %v1384_v53 = vpop.eup %1383 }
 0x1f3   : > { %v1386_v45 = vpop.eup %1385  ;;  %v1084_v57 = vrot.slane %v1384_v53, %v1083_v6 }
 0x1f4   : > { %v1088_v10 = vrot.slane %v1386_v45, %v1083_v6 }
 0x1f6   : > { %v1091_v1 = vcombine.low %v1084_v57, %v1088_v10 }
 0x1f8   : > { %v1093_v13 = vmul.f32 %v1387_v14, %v1091_v1 }
 0x1fa   : > { %1094 = vst [vmem:[%s201_s28] sm:$0xff] %v1093_v13 }
 0x1fb   : > { %1446 = shalt.err (!%p1443_p5)
}
 0x1fc   : > { %s1447_s29 = scalar_lea.hbm %s2911_s16, 128  ;;  %s1451_s12 = scalar_lea.hbm %s3614_s27, 256 }
 0x1fd   : > { %p1448_p10 = scmp.ne.s32.totalorder %s2911_s16, %s1447_s29  ;;  %p1452_p6 = scmp.lt.u32.totalorder %s2911_s16, %s3614_s27 }
 0x1fe   : > { %p1453_p13 = scmp.lt.u32.totalorder %s1451_s12, %s1447_s29  ;;  %p1455_p8 = scmp.lt.u32.totalorder %s1447_s29, %s2911_s16 }
 0x1ff   : > { %p1449_p2 = pnand %p1448_p10, %p3615_p9 }
 0x200   : > { %p1454_p4 = por %p1453_p13, %p1452_p6 }
 0x201   : > { %p1450_p1 = pneg %p1449_p2 }
 0x202   : > { %p1456_p11 = por %p1455_p8, %p1454_p4 }
 0x204   : > { %p1457_p7 = pnand %p1456_p11, %p1450_p1 }
 0x206   : > { %1460 = shalt.err (!%p1457_p7)
}
 0x207   : > { %1315 = dma.vmem_to_hbm [thread:$0]  (%p3615_p9), %s2913_s30, 128, %s2911_s16, %s1096_s5  }
 0x208 PF: > { %s3616_s14 = sld [smem:[#allocation12_spill]]  ;;  %s3617_s3 = sld [smem:[#allocation17_spill]] }
 0x209   : > { %s3618_s11 = sld [smem:[#allocation15_spill]] }
 0x20e   : > { %s1122_s25 = sand.u32 1, %s3616_s14   ;;  %p3619_p0 = scmp.ne.s32.totalorder %s3617_s3, 0 }
 0x20f   : > { %p3620_p3 = scmp.ge.s32.totalorder %s3618_s11, 2  ;;  %s1123_s13 = scalar_lea.sflag [#allocation5], %s1122_s25 }
 0x211   : > { %p1326_p12 = pnand %p3620_p3, %p3619_p0 }
 0x213   : > { %1486 = dma.done.wait (!%p1326_p12), %s1123_s13, 128  }
 0x214   : > { %1488 = vsyncadd (!%p1326_p12), %s1123_s13, 4294967168  ;;  %s3621_s17 = sld [smem:[#allocation18_spill]]  ;;  %s3622_s14 = sld [smem:[#allocation13_spill]] }
 0x215   : > { %s3623_s15 = sld [smem:[#allocation14_spill]]  ;;  %s3624_s16 = sld [smem:[#allocation19_spill]] }
 0x21a   : > { %p18_p5 = scmp.ge.s32.totalorder %s3621_s17, 4  }
 0x21c   :  { %20 = sbr.rel (!%p18_p5) target bundleno = 11 (0xb), region = 82 }
 0x223   :  { %1128 = vsyncpa [#allocation4], 1 }
 0x224   :  { %1130 = vsyncpa [#allocation4 + $0x1], 1 }
 0x225   :  { %1131 = vsyncpa [#allocation5], 1 }
 0x226   :  { %1133 = vsyncpa [#allocation5 + $0x1], 1 }
 0x227   :  { %1134 = vsyncpa [#allocation6], 1 }
 0x228   :  { %1136 = vsyncpa [#allocation6 + $0x1], 1 }

</bundles_post_ra>
